<compile_context>
chip_gen: v7x
topology: tpu7x:2x2x1
jax: 0.10.0
libtpu: 0.0.40
codegen_flags: <defaults>
</compile_context>

<pallas_src>
import functools

import jax
import jax.numpy as jnp
from jax.experimental import pallas as pl
from jax.experimental.pallas import tpu as pltpu

LANE = 128
BN_EPS = 1e-5


def _round_up(x, m):
    return (x + m - 1) // m * m


def _pick_tile(h, target):
    """Largest divisor of h that is <= target (keeps the grid exact)."""
    t = max(1, min(h, target))
    while h % t:
        t -= 1
    return t


def _pick_rows(r, target):
    """Largest multiple-of-8 divisor of r that is <= target (r is a multiple of 8)."""
    t = min(r, target)
    t -= t % 8
    while t > 8 and r % t:
        t -= 8
    return max(t, 8)


def _vmem_limit_bytes():
    """Per-generation scoped-VMEM budget (~3/4 of physical VMEM, 48 MiB fallback)."""
    phys = 64 * 1024 * 1024
    try:
        info = pltpu.get_tpu_info()
        cap = getattr(info, "vmem_capacity_bytes", None)
        if cap:
            phys = int(cap)
    except Exception:
        pass
    return (phys * 3) // 4


def _pass1_vmem_bytes(th, w, cpi, cpo, itemsize):
    win = 2 * (th + 2) * (w + 2) * cpi * itemsize        # halo double buffer
    acc = th * w * cpo * 4                               # f32 accumulator
    conv = 2 * th * w * cpo * itemsize                   # double-buffered conv output tile
    wts = 2 * 9 * cpi * cpo * itemsize                   # double-buffered weights
    return win + acc + conv + wts + 4 * 2 * cpo * 2


# ---------------------------------------------------------------------------
# Pass 1: 3x3 conv (9 accumulating MXU matmuls) + per-channel sum / sum-of-squares.
# Input halo window is manually DMA'd from HBM with double buffering.
# ---------------------------------------------------------------------------
def conv_stats_kernel(xpad_hbm, w_ref, conv_ref, stats_ref, win_buf, acc_ref, sem):
    """
    xpad_hbm : (N, H+2, W+2, Cpi)   padded image, stays in HBM (pl.ANY)
    w_ref    : (3, 3, Cpi, Cpo)     conv weights (VMEM, constant index map)
    conv_ref : (1, tH, W, Cpo)      conv output tile
    stats_ref: (2, Cpo)             [sum, sumsq] accumulator shared by all grid steps
    win_buf  : (2, tH+2, W+2, Cpi)  VMEM halo double buffer
    acc_ref  : (tH*W, Cpo) f32      matmul accumulator
    sem      : DMA semaphores (2,)
    """
    n = pl.program_id(0)
    h = pl.program_id(1)
    n_batches = pl.num_programs(0)
    n_htiles = pl.num_programs(1)

    _, tH, W, Cpo = conv_ref.shape
    _, tHp2, Wp2, Cpi = win_buf.shape

    slot = (n * n_htiles + h) & 1
    first = (n == 0) & (h == 0)
    last = (n == n_batches - 1) & (h == n_htiles - 1)

    def window_copy(nn, hh, ss):
        row0 = pl.multiple_of(hh * tH, tH)
        return pltpu.make_async_copy(
            xpad_hbm.at[nn, pl.ds(row0, tHp2)],   # (tH+2, W+2, Cpi), contiguous in HBM
            win_buf.at[ss],
            sem.at[ss])

    # Prime the pipeline on the very first grid step.
    @pl.when(first)
    def _prime():
        window_copy(n, h, slot).start()

    # Wait for this step's window (prefetched by the previous step, or primed above).
    window_copy(n, h, slot).wait()

    # Prefetch the next step's window into the other slot while we compute.
    @pl.when(jnp.logical_not(last))
    def _prefetch_next():
        wrap = h == n_htiles - 1
        h_nxt = jnp.where(wrap, 0, h + 1)
        n_nxt = jnp.where(wrap, n + 1, n)
        window_copy(n_nxt, h_nxt, 1 - slot).start()

    @pl.when(first)
    def _init_stats():
        stats_ref[...] = jnp.zeros_like(stats_ref)

    win = win_buf[slot]                                   # (tH+2, W+2, Cpi)

    # 3x3 conv as 9 accumulating matmuls (K = Cpi each), f32 accumulation on the MXU.
    first_tap = True
    for dy in range(3):
        for dx in range(3):
            patch = win[dy:dy + tH, dx:dx + W, :].reshape(tH * W, Cpi)
            contrib = jnp.dot(patch, w_ref[dy, dx],
                              preferred_element_type=jnp.float32)
            if first_tap:
                acc_ref[...] = contrib
                first_tap = False
            else:
                acc_ref[...] += contrib

    y = acc_ref[...]                                      # (tH*W, Cpo) f32
    conv_ref[...] = y.reshape(1, tH, W, Cpo).astype(conv_ref.dtype)

    s = jnp.sum(y, axis=0, keepdims=True)                 # (1, Cpo)
    ss = jnp.sum(y * y, axis=0, keepdims=True)            # (1, Cpo)
    stats_ref[...] += jnp.concatenate([s, ss], axis=0)    # (2, Cpo)


# ---------------------------------------------------------------------------
# Pass 2: BatchNorm (batch statistics) + ReLU over the flattened (N*H*W, Cpo) activation.
# ---------------------------------------------------------------------------
def bn_relu_kernel(conv_ref, stats_ref, gamma_ref, beta_ref, out_ref, *, inv_count):
    mean = stats_ref[0:1, :] * inv_count                           # (1, Cpo)
    var = jnp.maximum(stats_ref[1:2, :] * inv_count - mean * mean, 0.0)
    scale = gamma_ref[...] * jax.lax.rsqrt(var + BN_EPS)           # (1, Cpo)
    shift = beta_ref[...] - mean * scale
    x = conv_ref[...].astype(jnp.float32)                          # (tR, Cpo)
    out_ref[...] = jnp.maximum(x * scale + shift, 0.0).astype(out_ref.dtype)


def _bn_relu(conv_nhwc, stats, gamma_p, beta_p, count, *, out_dtype, vmem_limit,
             rows_target=2048):
    N, H, W, Cpo = conv_nhwc.shape
    R = N * H * W
    conv_flat = conv_nhwc.reshape(R, Cpo)
    tR = _pick_rows(R, rows_target)

    out = pl.pallas_call(
        functools.partial(bn_relu_kernel, inv_count=1.0 / float(count)),
        out_shape=jax.ShapeDtypeStruct((R, Cpo), out_dtype),
        grid=(R // tR,),
        in_specs=[
            pl.BlockSpec((tR, Cpo), lambda i: (i, 0)),
            pl.BlockSpec((2, Cpo), lambda i: (0, 0)),
            pl.BlockSpec((1, Cpo), lambda i: (0, 0)),
            pl.BlockSpec((1, Cpo), lambda i: (0, 0)),
        ],
        out_specs=pl.BlockSpec((tR, Cpo), lambda i: (i, 0)),
        compiler_params=pltpu.CompilerParams(
            dimension_semantics=("parallel",),
            vmem_limit_bytes=vmem_limit),
        cost_estimate=pl.CostEstimate(
            flops=3 * R * Cpo,
            transcendentals=Cpo,
            bytes_accessed=int(conv_flat.size * jnp.dtype(conv_flat.dtype).itemsize
                               + R * Cpo * jnp.dtype(out_dtype).itemsize + 16 * Cpo)),
    )(conv_flat, stats, gamma_p, beta_p)
    return out.reshape(N, H, W, Cpo)


# ---------------------------------------------------------------------------
# One Conv3x3(pad=1, no bias) + BN(batch stats) + ReLU layer.
# ---------------------------------------------------------------------------
def _conv_bn_relu_layer(x_nhwc, w_hwio, gamma, beta, *, store_dtype, m_target, vmem_limit):
    N, H, W, Cin = x_nhwc.shape
    kh, kw, Cin_w, Cout = w_hwio.shape
    assert (kh, kw) == (3, 3)
    assert W % 8 == 0, "W must be a multiple of 8  # TODO(synk): masked ragged tiles"

    Cpi = _round_up(Cin, LANE)
    Cpo = _round_up(Cout, LANE)
    itemsize = jnp.dtype(store_dtype).itemsize

    # Tile H so M = tH*W hits the m_target row range, shrinking if the VMEM budget says so.
    tH = _pick_tile(H, max(1, m_target // W))
    while _pass1_vmem_bytes(tH, W, Cpi, Cpo, itemsize) > vmem_limit and tH > 1:
        tH = _pick_tile(H, max(1, tH // 2))
    nH = H // tH

    # Fused pad: 1-pixel spatial halo + channel padding to lane width, then store dtype.
    xpad = jnp.pad(x_nhwc, ((0, 0), (1, 1), (1, 1), (0, Cpi - Cin))).astype(store_dtype)

    # Weights stay in (3, 3, Cpi, Cpo) tap layout (one (Cpi, Cpo) matmul per tap).
    w_p = jnp.pad(w_hwio, ((0, 0), (0, 0), (0, Cpi - Cin_w), (0, Cpo - Cout))
                  ).astype(store_dtype)

    # NOTE: gamma/beta are ZERO-padded -> padded lanes get scale=shift=0, so the channel
    # padding stays exactly zero through BN+ReLU and cannot pollute the next layer.
    g_p = jnp.pad(gamma.reshape(1, -1).astype(jnp.float32), ((0, 0), (0, Cpo - Cout)))
    b_p = jnp.pad(beta.reshape(1, -1).astype(jnp.float32), ((0, 0), (0, Cpo - Cout)))

    # --- pass 1: conv + stats accumulation ----------------------------------
    conv, stats = pl.pallas_call(
        conv_stats_kernel,
        out_shape=(jax.ShapeDtypeStruct((N, H, W, Cpo), store_dtype),
                   jax.ShapeDtypeStruct((2, Cpo), jnp.float32)),
        grid_spec=pltpu.PrefetchScalarGridSpec(
            num_scalar_prefetch=0,
            grid=(N, nH),
            in_specs=[
                pl.BlockSpec(memory_space=pl.ANY),                       # padded input, HBM
                pl.BlockSpec((3, 3, Cpi, Cpo), lambda n, h: (0, 0, 0, 0)),
            ],
            out_specs=(
                pl.BlockSpec((1, tH, W, Cpo), lambda n, h: (n, h, 0, 0)),
                pl.BlockSpec((2, Cpo), lambda n, h: (0, 0)),
            ),
            scratch_shapes=[
                pltpu.VMEM((2, tH + 2, W + 2, Cpi), store_dtype),        # halo double buffer
                pltpu.VMEM((tH * W, Cpo), jnp.float32),                  # f32 accumulator
                pltpu.SemaphoreType.DMA((2,)),
            ]),
        compiler_params=pltpu.CompilerParams(
            dimension_semantics=("arbitrary", "arbitrary"),  # shared stats + DMA priming
            vmem_limit_bytes=vmem_limit),
        cost_estimate=pl.CostEstimate(
            flops=2 * N * H * W * 9 * Cpi * Cpo,
            transcendentals=0,
            bytes_accessed=int((xpad.size + w_p.size + N * H * W * Cpo) * itemsize
                               + 8 * Cpo)),
    )(xpad, w_p)

    # --- pass 2: normalize + ReLU --------------------------------------------
    out = _bn_relu(conv, stats, g_p, b_p, N * H * W,
                   out_dtype=store_dtype, vmem_limit=vmem_limit)
    return out  # (N, H, W, Cpo); padded channels are exactly zero


def conv_block_forward(x_nchw, params, *, store_dtype=jnp.bfloat16, m_target=2048):
    """ConvBlock forward. Input/output are NCHW (PyTorch convention)."""
    Cout = params["w1"].shape[-1]
    vmem_limit = _vmem_limit_bytes()
    x = jnp.transpose(x_nchw, (0, 2, 3, 1))                               # NCHW -> NHWC
    # Conv bias intentionally NOT used: training-mode BN cancels it exactly.
    a1 = _conv_bn_relu_layer(x, params["w1"], params["g1"], params["beta1"],
                             store_dtype=store_dtype, m_target=m_target,
                             vmem_limit=vmem_limit)
    a2 = _conv_bn_relu_layer(a1, params["w2"], params["g2"], params["beta2"],
                             store_dtype=store_dtype, m_target=m_target,
                             vmem_limit=vmem_limit)
    out = a2[..., :Cout]                                                  # drop lane padding
    return jnp.transpose(out, (0, 3, 1, 2))                               # NHWC -> NCHW


# ---------------------------------------------------------------------------
# Pure-JAX reference (correctness check only) — includes the conv bias to demonstrate
# that it is cancelled by training-mode BatchNorm.
# ---------------------------------------------------------------------------
def _ref_layer(x_nhwc, w, b, gamma, beta):
    y = jax.lax.conv_general_dilated(
        x_nhwc, w, window_strides=(1, 1), padding="SAME",
        dimension_numbers=("NHWC", "HWIO", "NHWC"),
    ) + b.reshape(1, 1, 1, -1)
    mean = jnp.mean(y, axis=(0, 1, 2), keepdims=True)
    var = jnp.mean(jnp.square(y - mean), axis=(0, 1, 2), keepdims=True)
    y = (y - mean) / jnp.sqrt(var + BN_EPS) * gamma.reshape(1, 1, 1, -1) + beta.reshape(1, 1, 1, -1)
    return jnp.maximum(y, 0.0)


def conv_block_reference(x_nchw, params):
    x = jnp.transpose(x_nchw, (0, 2, 3, 1))
    x = _ref_layer(x, params["w1"], params["b1"], params["g1"], params["beta1"])
    x = _ref_layer(x, params["w2"], params["b2"], params["g2"], params["beta2"])
    return jnp.transpose(x, (0, 3, 1, 2))


if __name__ == "__main__":
    N, Cin, H, W = 2, 4, 16, 16
    Cout = 8

    key = jax.random.PRNGKey(0)
    kx, kw1, kb1, kg1, kbe1, kw2, kb2, kg2, kbe2 = jax.random.split(key, 9)

    x = jax.random.normal(kx, (N, Cin, H, W), dtype=jnp.float32)

    params = {
        "w1": 0.1 * jax.random.normal(kw1, (3, 3, Cin, Cout), jnp.float32),
        "b1": 0.1 * jax.random.normal(kb1, (Cout,), jnp.float32),
        "g1": 1.0 + 0.1 * jax.random.normal(kg1, (Cout,), jnp.float32),
        "beta1": 0.1 * jax.random.normal(kbe1, (Cout,), jnp.float32),
        "w2": 0.1 * jax.random.normal(kw2, (3, 3, Cout, Cout), jnp.float32),
        "b2": 0.1 * jax.random.normal(kb2, (Cout,), jnp.float32),
        "g2": 1.0 + 0.1 * jax.random.normal(kg2, (Cout,), jnp.float32),
        "beta2": 0.1 * jax.random.normal(kbe2, (Cout,), jnp.float32),
    }

    ref = jax.block_until_ready(conv_block_reference(x, params))

    # f32 path, small m_target so the tiny test image still exercises the multi-tile
    # halo-window prefetch and the cross-step stats accumulation (tH=8, nH=2).
    out32 = jax.block_until_ready(
        conv_block_forward(x, params, store_dtype=jnp.float32, m_target=128))
    assert out32.shape == (N, Cout, H, W), out32.shape
    err32 = float(jnp.max(jnp.abs(out32 - ref)))
    assert jnp.allclose(out32, ref, rtol=1e-3, atol=1e-3), err32

    # bf16 storage path (production default); compare against a reference driven by the
    # same bf16-rounded inputs/weights so only intermediate-storage rounding remains.
    out16 = jax.block_until_ready(
        conv_block_forward(x, params, store_dtype=jnp.bfloat16, m_target=128))
    bf = lambda a: a.astype(jnp.bfloat16).astype(jnp.float32)
    params_bf = dict(params)
    params_bf["w1"] = bf(params["w1"])
    params_bf["w2"] = bf(params["w2"])
    ref_bf = jax.block_until_ready(conv_block_reference(bf(x), params_bf))
    err16 = float(jnp.max(jnp.abs(out16.astype(jnp.float32) - ref_bf)))
    assert jnp.allclose(out16.astype(jnp.float32), ref_bf, rtol=5e-2, atol=5e-2), err16

    print("KERNEL_OK")
</pallas_src>

<mosaic_0001>
module attributes {stable_mosaic.version = 11 : i64} {
  func.func @conv_stats_kernel(%arg0: i32, %arg1: i32, %arg2: memref<2x18x18x128xf32, #tpu.memory_space<any>>, %arg3: memref<3x3x128x128xf32, #tpu.memory_space<vmem>>, %arg4: memref<1x8x16x128xf32, #tpu.memory_space<vmem>>, %arg5: memref<2x128xf32, #tpu.memory_space<vmem>>, %arg6: memref<2x10x18x128xf32, #tpu.memory_space<vmem>>, %arg7: memref<128x128xf32, #tpu.memory_space<vmem>>, %arg8: memref<2x!tpu.dma_semaphore, #tpu.memory_space<semaphore_mem>>) attributes {dimension_semantics = [#tpu.dimension_semantics<arbitrary>, #tpu.dimension_semantics<arbitrary>], iteration_bounds = array<i64: 2, 2>, scalar_prefetch = 0 : i64, scratch_operands = 3 : i64, tpu.core_type = #tpu.core_type<tc>, window_params = [{}, {pipeline_mode = #tpu.pipeline_mode<synchronous>, transform_indices = @transform_1, window_bounds = array<i64: 3, 3, 128, 128>}, {transform_indices = @transform_2, window_bounds = array<i64: 1, 8, 16, 128>}, {pipeline_mode = #tpu.pipeline_mode<synchronous>, transform_indices = @transform_3, window_bounds = array<i64: 2, 128>}]} {
    %c2_i32 = arith.constant 2 : i32
    %0 = arith.muli %arg0, %c2_i32 : i32
    %1 = arith.addi %0, %arg1 : i32
    %c1_i32 = arith.constant 1 : i32
    %2 = arith.andi %1, %c1_i32 : i32
    %c0_i32 = arith.constant 0 : i32
    %3 = arith.cmpi eq, %arg0, %c0_i32 : i32
    %c0_i32_0 = arith.constant 0 : i32
    %4 = arith.cmpi eq, %arg1, %c0_i32_0 : i32
    %5 = arith.andi %3, %4 : i1
    %c1_i32_1 = arith.constant 1 : i32
    %6 = arith.cmpi eq, %arg0, %c1_i32_1 : i32
    %c1_i32_2 = arith.constant 1 : i32
    %7 = arith.cmpi eq, %arg1, %c1_i32_2 : i32
    %8 = arith.andi %6, %7 : i1
    %9 = arith.extui %5 : i1 to i32
    %c0_i32_3 = arith.constant 0 : i32
    %10 = arith.cmpi ne, %9, %c0_i32_3 : i32
    scf.if %10 {
      %c8_i32_101 = arith.constant 8 : i32
      %109 = arith.muli %arg1, %c8_i32_101 : i32
      %110 = tpu.assume_multiple %109, 8 : i32
      %c0_i32_102 = arith.constant 0 : i32
      %c0_i32_103 = arith.constant 0 : i32
      %111 = tpu.memref_slice %arg2[%arg0, %110, %c0_i32_102, %c0_i32_103] : memref<2x18x18x128xf32, #tpu.memory_space<any>> -> memref<1x10x18x128xf32, #tpu.memory_space<any>>
      %112 = tpu.memref_squeeze %111 : memref<1x10x18x128xf32, #tpu.memory_space<any>> -> memref<10x18x128xf32, #tpu.memory_space<any>>
      %c0_i32_104 = arith.constant 0 : i32
      %c0_i32_105 = arith.constant 0 : i32
      %c0_i32_106 = arith.constant 0 : i32
      %113 = tpu.memref_slice %arg6[%2, %c0_i32_104, %c0_i32_105, %c0_i32_106] : memref<2x10x18x128xf32, #tpu.memory_space<vmem>> -> memref<1x10x18x128xf32, #tpu.memory_space<vmem>>
      %114 = tpu.memref_squeeze %113 : memref<1x10x18x128xf32, #tpu.memory_space<vmem>> -> memref<10x18x128xf32, #tpu.memory_space<vmem>>
      %115 = tpu.memref_slice %arg8[%2] : memref<2x!tpu.dma_semaphore, #tpu.memory_space<semaphore_mem>> -> memref<1x!tpu.dma_semaphore, #tpu.memory_space<semaphore_mem>>
      %116 = tpu.memref_squeeze %115 : memref<1x!tpu.dma_semaphore, #tpu.memory_space<semaphore_mem>> -> memref<!tpu.dma_semaphore, #tpu.memory_space<semaphore_mem>>
      tpu.enqueue_dma source(%112 : memref<10x18x128xf32, #tpu.memory_space<any>>) target(%114 : memref<10x18x128xf32, #tpu.memory_space<vmem>>) target_semaphore(%116 : memref<!tpu.dma_semaphore, #tpu.memory_space<semaphore_mem>>)
    } else {
    }
    %c8_i32 = arith.constant 8 : i32
    %11 = arith.muli %arg1, %c8_i32 : i32
    %12 = tpu.assume_multiple %11, 8 : i32
    %c0_i32_4 = arith.constant 0 : i32
    %c0_i32_5 = arith.constant 0 : i32
    %13 = tpu.memref_slice %arg2[%arg0, %12, %c0_i32_4, %c0_i32_5] : memref<2x18x18x128xf32, #tpu.memory_space<any>> -> memref<1x10x18x128xf32, #tpu.memory_space<any>>
    %14 = tpu.memref_squeeze %13 : memref<1x10x18x128xf32, #tpu.memory_space<any>> -> memref<10x18x128xf32, #tpu.memory_space<any>>
    %c0_i32_6 = arith.constant 0 : i32
    %c0_i32_7 = arith.constant 0 : i32
    %c0_i32_8 = arith.constant 0 : i32
    %15 = tpu.memref_slice %arg6[%2, %c0_i32_6, %c0_i32_7, %c0_i32_8] : memref<2x10x18x128xf32, #tpu.memory_space<vmem>> -> memref<1x10x18x128xf32, #tpu.memory_space<vmem>>
    %16 = tpu.memref_squeeze %15 : memref<1x10x18x128xf32, #tpu.memory_space<vmem>> -> memref<10x18x128xf32, #tpu.memory_space<vmem>>
    %17 = tpu.memref_slice %arg8[%2] : memref<2x!tpu.dma_semaphore, #tpu.memory_space<semaphore_mem>> -> memref<1x!tpu.dma_semaphore, #tpu.memory_space<semaphore_mem>>
    %18 = tpu.memref_squeeze %17 : memref<1x!tpu.dma_semaphore, #tpu.memory_space<semaphore_mem>> -> memref<!tpu.dma_semaphore, #tpu.memory_space<semaphore_mem>>
    tpu.wait_dma2 semaphore(%18 : memref<!tpu.dma_semaphore, #tpu.memory_space<semaphore_mem>>) src(%14 : memref<10x18x128xf32, #tpu.memory_space<any>>) dst(%16 : memref<10x18x128xf32, #tpu.memory_space<vmem>>)
    %true = arith.constant true
    %19 = arith.xori %8, %true : i1
    %20 = arith.extui %19 : i1 to i32
    %c0_i32_9 = arith.constant 0 : i32
    %21 = arith.cmpi ne, %20, %c0_i32_9 : i32
    scf.if %21 {
      %c1_i32_101 = arith.constant 1 : i32
      %109 = arith.cmpi eq, %arg1, %c1_i32_101 : i32
      %c1_i32_102 = arith.constant 1 : i32
      %110 = arith.addi %arg1, %c1_i32_102 : i32
      %c0_i32_103 = arith.constant 0 : i32
      %111 = arith.select %109, %c0_i32_103, %110 : i32
      %c1_i32_104 = arith.constant 1 : i32
      %112 = arith.addi %arg0, %c1_i32_104 : i32
      %113 = arith.select %109, %112, %arg0 : i32
      %c1_i32_105 = arith.constant 1 : i32
      %114 = arith.subi %c1_i32_105, %2 : i32
      %c8_i32_106 = arith.constant 8 : i32
      %115 = arith.muli %111, %c8_i32_106 : i32
      %116 = tpu.assume_multiple %115, 8 : i32
      %c0_i32_107 = arith.constant 0 : i32
      %c0_i32_108 = arith.constant 0 : i32
      %117 = tpu.memref_slice %arg2[%113, %116, %c0_i32_107, %c0_i32_108] : memref<2x18x18x128xf32, #tpu.memory_space<any>> -> memref<1x10x18x128xf32, #tpu.memory_space<any>>
      %118 = tpu.memref_squeeze %117 : memref<1x10x18x128xf32, #tpu.memory_space<any>> -> memref<10x18x128xf32, #tpu.memory_space<any>>
      %c0_i32_109 = arith.constant 0 : i32
      %c0_i32_110 = arith.constant 0 : i32
      %c0_i32_111 = arith.constant 0 : i32
      %119 = tpu.memref_slice %arg6[%114, %c0_i32_109, %c0_i32_110, %c0_i32_111] : memref<2x10x18x128xf32, #tpu.memory_space<vmem>> -> memref<1x10x18x128xf32, #tpu.memory_space<vmem>>
      %120 = tpu.memref_squeeze %119 : memref<1x10x18x128xf32, #tpu.memory_space<vmem>> -> memref<10x18x128xf32, #tpu.memory_space<vmem>>
      %121 = tpu.memref_slice %arg8[%114] : memref<2x!tpu.dma_semaphore, #tpu.memory_space<semaphore_mem>> -> memref<1x!tpu.dma_semaphore, #tpu.memory_space<semaphore_mem>>
      %122 = tpu.memref_squeeze %121 : memref<1x!tpu.dma_semaphore, #tpu.memory_space<semaphore_mem>> -> memref<!tpu.dma_semaphore, #tpu.memory_space<semaphore_mem>>
      tpu.enqueue_dma source(%118 : memref<10x18x128xf32, #tpu.memory_space<any>>) target(%120 : memref<10x18x128xf32, #tpu.memory_space<vmem>>) target_semaphore(%122 : memref<!tpu.dma_semaphore, #tpu.memory_space<semaphore_mem>>)
    } else {
    }
    %22 = arith.extui %5 : i1 to i32
    %c0_i32_10 = arith.constant 0 : i32
    %23 = arith.cmpi ne, %22, %c0_i32_10 : i32
    scf.if %23 {
      %cst_101 = arith.constant 0.000000e+00 : f32
      %109 = vector.broadcast %cst_101 : f32 to vector<2x128xf32>
      %c0_102 = arith.constant 0 : index
      %c0_103 = arith.constant 0 : index
      %110 = vector.load %arg5[%c0_102, %c0_103] : memref<2x128xf32, #tpu.memory_space<vmem>>, vector<2x128xf32>
      tpu.vector_store %arg5[%c0_102, %c0_103], %109 {strides = array<i32>} : memref<2x128xf32, #tpu.memory_space<vmem>>, vector<2x128xf32>,
    } else {
    }
    %24 = arith.index_cast %2 : i32 to index
    %c0 = arith.constant 0 : index
    %c0_11 = arith.constant 0 : index
    %c0_12 = arith.constant 0 : index
    %25 = vector.load %arg6[%24, %c0, %c0_11, %c0_12] : memref<2x10x18x128xf32, #tpu.memory_space<vmem>>, vector<1x10x18x128xf32>
    %26 = vector.shape_cast %25 : vector<1x10x18x128xf32> to vector<10x18x128xf32>
    %27 = vector.extract_strided_slice %26 {offsets = [0, 0, 0], sizes = [8, 16, 128], strides = [1, 1, 1]} : vector<10x18x128xf32> to vector<8x16x128xf32>
    %28 = vector.shape_cast %27 : vector<8x16x128xf32> to vector<128x128xf32>
    %c0_13 = arith.constant 0 : index
    %c0_14 = arith.constant 0 : index
    %c0_15 = arith.constant 0 : index
    %c0_16 = arith.constant 0 : index
    %29 = vector.load %arg3[%c0_13, %c0_14, %c0_15, %c0_16] : memref<3x3x128x128xf32, #tpu.memory_space<vmem>>, vector<1x1x128x128xf32>
    %30 = vector.shape_cast %29 : vector<1x1x128x128xf32> to vector<128x128xf32>
    %cst = arith.constant dense<0.000000e+00> : vector<128x128xf32>
    %31 = tpu.matmul %28, %30, %cst {dimension_numbers = #tpu.dot_dimension_numbers<[1], [0], [0], [1], [0, 0, 1, 1], [], []>} : vector<128x128xf32>, vector<128x128xf32>, vector<128x128xf32> -> vector<128x128xf32>
    %c0_17 = arith.constant 0 : index
    %c0_18 = arith.constant 0 : index
    %32 = vector.load %arg7[%c0_17, %c0_18] : memref<128x128xf32, #tpu.memory_space<vmem>>, vector<128x128xf32>
    tpu.vector_store %arg7[%c0_17, %c0_18], %31 {strides = array<i32>} : memref<128x128xf32, #tpu.memory_space<vmem>>, vector<128x128xf32>,
    %33 = vector.extract_strided_slice %26 {offsets = [0, 1, 0], sizes = [8, 16, 128], strides = [1, 1, 1]} : vector<10x18x128xf32> to vector<8x16x128xf32>
    %34 = vector.shape_cast %33 : vector<8x16x128xf32> to vector<128x128xf32>
    %c0_19 = arith.constant 0 : index
    %c1 = arith.constant 1 : index
    %c0_20 = arith.constant 0 : index
    %c0_21 = arith.constant 0 : index
    %35 = vector.load %arg3[%c0_19, %c1, %c0_20, %c0_21] : memref<3x3x128x128xf32, #tpu.memory_space<vmem>>, vector<1x1x128x128xf32>
    %36 = vector.shape_cast %35 : vector<1x1x128x128xf32> to vector<128x128xf32>
    %cst_22 = arith.constant dense<0.000000e+00> : vector<128x128xf32>
    %37 = tpu.matmul %34, %36, %cst_22 {dimension_numbers = #tpu.dot_dimension_numbers<[1], [0], [0], [1], [0, 0, 1, 1], [], []>} : vector<128x128xf32>, vector<128x128xf32>, vector<128x128xf32> -> vector<128x128xf32>
    %c0_23 = arith.constant 0 : index
    %c0_24 = arith.constant 0 : index
    %38 = vector.load %arg7[%c0_23, %c0_24] : memref<128x128xf32, #tpu.memory_space<vmem>>, vector<128x128xf32>
    %39 = arith.addf %38, %37 : vector<128x128xf32>
    %c0_25 = arith.constant 0 : index
    %c0_26 = arith.constant 0 : index
    %40 = vector.load %arg7[%c0_25, %c0_26] : memref<128x128xf32, #tpu.memory_space<vmem>>, vector<128x128xf32>
    tpu.vector_store %arg7[%c0_25, %c0_26], %39 {strides = array<i32>} : memref<128x128xf32, #tpu.memory_space<vmem>>, vector<128x128xf32>,
    %41 = vector.extract_strided_slice %26 {offsets = [0, 2, 0], sizes = [8, 16, 128], strides = [1, 1, 1]} : vector<10x18x128xf32> to vector<8x16x128xf32>
    %42 = vector.shape_cast %41 : vector<8x16x128xf32> to vector<128x128xf32>
    %c0_27 = arith.constant 0 : index
    %c2 = arith.constant 2 : index
    %c0_28 = arith.constant 0 : index
    %c0_29 = arith.constant 0 : index
    %43 = vector.load %arg3[%c0_27, %c2, %c0_28, %c0_29] : memref<3x3x128x128xf32, #tpu.memory_space<vmem>>, vector<1x1x128x128xf32>
    %44 = vector.shape_cast %43 : vector<1x1x128x128xf32> to vector<128x128xf32>
    %cst_30 = arith.constant dense<0.000000e+00> : vector<128x128xf32>
    %45 = tpu.matmul %42, %44, %cst_30 {dimension_numbers = #tpu.dot_dimension_numbers<[1], [0], [0], [1], [0, 0, 1, 1], [], []>} : vector<128x128xf32>, vector<128x128xf32>, vector<128x128xf32> -> vector<128x128xf32>
    %c0_31 = arith.constant 0 : index
    %c0_32 = arith.constant 0 : index
    %46 = vector.load %arg7[%c0_31, %c0_32] : memref<128x128xf32, #tpu.memory_space<vmem>>, vector<128x128xf32>
    %47 = arith.addf %46, %45 : vector<128x128xf32>
    %c0_33 = arith.constant 0 : index
    %c0_34 = arith.constant 0 : index
    %48 = vector.load %arg7[%c0_33, %c0_34] : memref<128x128xf32, #tpu.memory_space<vmem>>, vector<128x128xf32>
    tpu.vector_store %arg7[%c0_33, %c0_34], %47 {strides = array<i32>} : memref<128x128xf32, #tpu.memory_space<vmem>>, vector<128x128xf32>,
    %49 = vector.extract_strided_slice %26 {offsets = [1, 0, 0], sizes = [8, 16, 128], strides = [1, 1, 1]} : vector<10x18x128xf32> to vector<8x16x128xf32>
    %50 = vector.shape_cast %49 : vector<8x16x128xf32> to vector<128x128xf32>
    %c1_35 = arith.constant 1 : index
    %c0_36 = arith.constant 0 : index
    %c0_37 = arith.constant 0 : index
    %c0_38 = arith.constant 0 : index
    %51 = vector.load %arg3[%c1_35, %c0_36, %c0_37, %c0_38] : memref<3x3x128x128xf32, #tpu.memory_space<vmem>>, vector<1x1x128x128xf32>
    %52 = vector.shape_cast %51 : vector<1x1x128x128xf32> to vector<128x128xf32>
    %cst_39 = arith.constant dense<0.000000e+00> : vector<128x128xf32>
    %53 = tpu.matmul %50, %52, %cst_39 {dimension_numbers = #tpu.dot_dimension_numbers<[1], [0], [0], [1], [0, 0, 1, 1], [], []>} : vector<128x128xf32>, vector<128x128xf32>, vector<128x128xf32> -> vector<128x128xf32>
    %c0_40 = arith.constant 0 : index
    %c0_41 = arith.constant 0 : index
    %54 = vector.load %arg7[%c0_40, %c0_41] : memref<128x128xf32, #tpu.memory_space<vmem>>, vector<128x128xf32>
    %55 = arith.addf %54, %53 : vector<128x128xf32>
    %c0_42 = arith.constant 0 : index
    %c0_43 = arith.constant 0 : index
    %56 = vector.load %arg7[%c0_42, %c0_43] : memref<128x128xf32, #tpu.memory_space<vmem>>, vector<128x128xf32>
    tpu.vector_store %arg7[%c0_42, %c0_43], %55 {strides = array<i32>} : memref<128x128xf32, #tpu.memory_space<vmem>>, vector<128x128xf32>,
    %57 = vector.extract_strided_slice %26 {offsets = [1, 1, 0], sizes = [8, 16, 128], strides = [1, 1, 1]} : vector<10x18x128xf32> to vector<8x16x128xf32>
    %58 = vector.shape_cast %57 : vector<8x16x128xf32> to vector<128x128xf32>
    %c1_44 = arith.constant 1 : index
    %c1_45 = arith.constant 1 : index
    %c0_46 = arith.constant 0 : index
    %c0_47 = arith.constant 0 : index
    %59 = vector.load %arg3[%c1_44, %c1_45, %c0_46, %c0_47] : memref<3x3x128x128xf32, #tpu.memory_space<vmem>>, vector<1x1x128x128xf32>
    %60 = vector.shape_cast %59 : vector<1x1x128x128xf32> to vector<128x128xf32>
    %cst_48 = arith.constant dense<0.000000e+00> : vector<128x128xf32>
    %61 = tpu.matmul %58, %60, %cst_48 {dimension_numbers = #tpu.dot_dimension_numbers<[1], [0], [0], [1], [0, 0, 1, 1], [], []>} : vector<128x128xf32>, vector<128x128xf32>, vector<128x128xf32> -> vector<128x128xf32>
    %c0_49 = arith.constant 0 : index
    %c0_50 = arith.constant 0 : index
    %62 = vector.load %arg7[%c0_49, %c0_50] : memref<128x128xf32, #tpu.memory_space<vmem>>, vector<128x128xf32>
    %63 = arith.addf %62, %61 : vector<128x128xf32>
    %c0_51 = arith.constant 0 : index
    %c0_52 = arith.constant 0 : index
    %64 = vector.load %arg7[%c0_51, %c0_52] : memref<128x128xf32, #tpu.memory_space<vmem>>, vector<128x128xf32>
    tpu.vector_store %arg7[%c0_51, %c0_52], %63 {strides = array<i32>} : memref<128x128xf32, #tpu.memory_space<vmem>>, vector<128x128xf32>,
    %65 = vector.extract_strided_slice %26 {offsets = [1, 2, 0], sizes = [8, 16, 128], strides = [1, 1, 1]} : vector<10x18x128xf32> to vector<8x16x128xf32>
    %66 = vector.shape_cast %65 : vector<8x16x128xf32> to vector<128x128xf32>
    %c1_53 = arith.constant 1 : index
    %c2_54 = arith.constant 2 : index
    %c0_55 = arith.constant 0 : index
    %c0_56 = arith.constant 0 : index
    %67 = vector.load %arg3[%c1_53, %c2_54, %c0_55, %c0_56] : memref<3x3x128x128xf32, #tpu.memory_space<vmem>>, vector<1x1x128x128xf32>
    %68 = vector.shape_cast %67 : vector<1x1x128x128xf32> to vector<128x128xf32>
    %cst_57 = arith.constant dense<0.000000e+00> : vector<128x128xf32>
    %69 = tpu.matmul %66, %68, %cst_57 {dimension_numbers = #tpu.dot_dimension_numbers<[1], [0], [0], [1], [0, 0, 1, 1], [], []>} : vector<128x128xf32>, vector<128x128xf32>, vector<128x128xf32> -> vector<128x128xf32>
    %c0_58 = arith.constant 0 : index
    %c0_59 = arith.constant 0 : index
    %70 = vector.load %arg7[%c0_58, %c0_59] : memref<128x128xf32, #tpu.memory_space<vmem>>, vector<128x128xf32>
    %71 = arith.addf %70, %69 : vector<128x128xf32>
    %c0_60 = arith.constant 0 : index
    %c0_61 = arith.constant 0 : index
    %72 = vector.load %arg7[%c0_60, %c0_61] : memref<128x128xf32, #tpu.memory_space<vmem>>, vector<128x128xf32>
    tpu.vector_store %arg7[%c0_60, %c0_61], %71 {strides = array<i32>} : memref<128x128xf32, #tpu.memory_space<vmem>>, vector<128x128xf32>,
    %73 = vector.extract_strided_slice %26 {offsets = [2, 0, 0], sizes = [8, 16, 128], strides = [1, 1, 1]} : vector<10x18x128xf32> to vector<8x16x128xf32>
    %74 = vector.shape_cast %73 : vector<8x16x128xf32> to vector<128x128xf32>
    %c2_62 = arith.constant 2 : index
    %c0_63 = arith.constant 0 : index
    %c0_64 = arith.constant 0 : index
    %c0_65 = arith.constant 0 : index
    %75 = vector.load %arg3[%c2_62, %c0_63, %c0_64, %c0_65] : memref<3x3x128x128xf32, #tpu.memory_space<vmem>>, vector<1x1x128x128xf32>
    %76 = vector.shape_cast %75 : vector<1x1x128x128xf32> to vector<128x128xf32>
    %cst_66 = arith.constant dense<0.000000e+00> : vector<128x128xf32>
    %77 = tpu.matmul %74, %76, %cst_66 {dimension_numbers = #tpu.dot_dimension_numbers<[1], [0], [0], [1], [0, 0, 1, 1], [], []>} : vector<128x128xf32>, vector<128x128xf32>, vector<128x128xf32> -> vector<128x128xf32>
    %c0_67 = arith.constant 0 : index
    %c0_68 = arith.constant 0 : index
    %78 = vector.load %arg7[%c0_67, %c0_68] : memref<128x128xf32, #tpu.memory_space<vmem>>, vector<128x128xf32>
    %79 = arith.addf %78, %77 : vector<128x128xf32>
    %c0_69 = arith.constant 0 : index
    %c0_70 = arith.constant 0 : index
    %80 = vector.load %arg7[%c0_69, %c0_70] : memref<128x128xf32, #tpu.memory_space<vmem>>, vector<128x128xf32>
    tpu.vector_store %arg7[%c0_69, %c0_70], %79 {strides = array<i32>} : memref<128x128xf32, #tpu.memory_space<vmem>>, vector<128x128xf32>,
    %81 = vector.extract_strided_slice %26 {offsets = [2, 1, 0], sizes = [8, 16, 128], strides = [1, 1, 1]} : vector<10x18x128xf32> to vector<8x16x128xf32>
    %82 = vector.shape_cast %81 : vector<8x16x128xf32> to vector<128x128xf32>
    %c2_71 = arith.constant 2 : index
    %c1_72 = arith.constant 1 : index
    %c0_73 = arith.constant 0 : index
    %c0_74 = arith.constant 0 : index
    %83 = vector.load %arg3[%c2_71, %c1_72, %c0_73, %c0_74] : memref<3x3x128x128xf32, #tpu.memory_space<vmem>>, vector<1x1x128x128xf32>
    %84 = vector.shape_cast %83 : vector<1x1x128x128xf32> to vector<128x128xf32>
    %cst_75 = arith.constant dense<0.000000e+00> : vector<128x128xf32>
    %85 = tpu.matmul %82, %84, %cst_75 {dimension_numbers = #tpu.dot_dimension_numbers<[1], [0], [0], [1], [0, 0, 1, 1], [], []>} : vector<128x128xf32>, vector<128x128xf32>, vector<128x128xf32> -> vector<128x128xf32>
    %c0_76 = arith.constant 0 : index
    %c0_77 = arith.constant 0 : index
    %86 = vector.load %arg7[%c0_76, %c0_77] : memref<128x128xf32, #tpu.memory_space<vmem>>, vector<128x128xf32>
    %87 = arith.addf %86, %85 : vector<128x128xf32>
    %c0_78 = arith.constant 0 : index
    %c0_79 = arith.constant 0 : index
    %88 = vector.load %arg7[%c0_78, %c0_79] : memref<128x128xf32, #tpu.memory_space<vmem>>, vector<128x128xf32>
    tpu.vector_store %arg7[%c0_78, %c0_79], %87 {strides = array<i32>} : memref<128x128xf32, #tpu.memory_space<vmem>>, vector<128x128xf32>,
    %89 = vector.extract_strided_slice %26 {offsets = [2, 2, 0], sizes = [8, 16, 128], strides = [1, 1, 1]} : vector<10x18x128xf32> to vector<8x16x128xf32>
    %90 = vector.shape_cast %89 : vector<8x16x128xf32> to vector<128x128xf32>
    %c2_80 = arith.constant 2 : index
    %c2_81 = arith.constant 2 : index
    %c0_82 = arith.constant 0 : index
    %c0_83 = arith.constant 0 : index
    %91 = vector.load %arg3[%c2_80, %c2_81, %c0_82, %c0_83] : memref<3x3x128x128xf32, #tpu.memory_space<vmem>>, vector<1x1x128x128xf32>
    %92 = vector.shape_cast %91 : vector<1x1x128x128xf32> to vector<128x128xf32>
    %cst_84 = arith.constant dense<0.000000e+00> : vector<128x128xf32>
    %93 = tpu.matmul %90, %92, %cst_84 {dimension_numbers = #tpu.dot_dimension_numbers<[1], [0], [0], [1], [0, 0, 1, 1], [], []>} : vector<128x128xf32>, vector<128x128xf32>, vector<128x128xf32> -> vector<128x128xf32>
    %c0_85 = arith.constant 0 : index
    %c0_86 = arith.constant 0 : index
    %94 = vector.load %arg7[%c0_85, %c0_86] : memref<128x128xf32, #tpu.memory_space<vmem>>, vector<128x128xf32>
    %95 = arith.addf %94, %93 : vector<128x128xf32>
    %c0_87 = arith.constant 0 : index
    %c0_88 = arith.constant 0 : index
    %96 = vector.load %arg7[%c0_87, %c0_88] : memref<128x128xf32, #tpu.memory_space<vmem>>, vector<128x128xf32>
    tpu.vector_store %arg7[%c0_87, %c0_88], %95 {strides = array<i32>} : memref<128x128xf32, #tpu.memory_space<vmem>>, vector<128x128xf32>,
    %c0_89 = arith.constant 0 : index
    %c0_90 = arith.constant 0 : index
    %97 = vector.load %arg7[%c0_89, %c0_90] : memref<128x128xf32, #tpu.memory_space<vmem>>, vector<128x128xf32>
    %98 = vector.shape_cast %97 : vector<128x128xf32> to vector<1x8x16x128xf32>
    %c0_91 = arith.constant 0 : index
    %c0_92 = arith.constant 0 : index
    %c0_93 = arith.constant 0 : index
    %c0_94 = arith.constant 0 : index
    %99 = vector.load %arg4[%c0_91, %c0_92, %c0_93, %c0_94] : memref<1x8x16x128xf32, #tpu.memory_space<vmem>>, vector<1x8x16x128xf32>
    tpu.vector_store %arg4[%c0_91, %c0_92, %c0_93, %c0_94], %98 {strides = array<i32>} : memref<1x8x16x128xf32, #tpu.memory_space<vmem>>, vector<1x8x16x128xf32>,
    %cst_95 = arith.constant dense<0.000000e+00> : vector<128xf32>
    %100 = vector.multi_reduction <add>, %97, %cst_95 [0] : vector<128x128xf32> to vector<128xf32>
    %101 = vector.shape_cast %100 : vector<128xf32> to vector<1x128xf32>
    %102 = arith.mulf %97, %97 : vector<128x128xf32>
    %cst_96 = arith.constant dense<0.000000e+00> : vector<128xf32>
    %103 = vector.multi_reduction <add>, %102, %cst_96 [0] : vector<128x128xf32> to vector<128xf32>
    %104 = vector.shape_cast %103 : vector<128xf32> to vector<1x128xf32>
    %c0_97 = arith.constant 0 : index
    %c0_98 = arith.constant 0 : index
    %105 = vector.load %arg5[%c0_97, %c0_98] : memref<2x128xf32, #tpu.memory_space<vmem>>, vector<2x128xf32>
    %106 = tpu.concatenate %101, %104 in 0 : vector<1x128xf32>, vector<1x128xf32> -> vector<2x128xf32>
    %107 = arith.addf %105, %106 : vector<2x128xf32>
    %c0_99 = arith.constant 0 : index
    %c0_100 = arith.constant 0 : index
    %108 = vector.load %arg5[%c0_99, %c0_100] : memref<2x128xf32, #tpu.memory_space<vmem>>, vector<2x128xf32>
    tpu.vector_store %arg5[%c0_99, %c0_100], %107 {strides = array<i32>} : memref<2x128xf32, #tpu.memory_space<vmem>>, vector<2x128xf32>,
    return
  }
  func.func @transform_1(%arg0: i32, %arg1: i32) -> (i32, i32, i32, i32) {
    %c0_i32 = arith.constant 0 : i32
    %c0_i32_0 = arith.constant 0 : i32
    %c0_i32_1 = arith.constant 0 : i32
    %c0_i32_2 = arith.constant 0 : i32
    %c0_i32_3 = arith.constant 0 : i32
    return %c0_i32, %c0_i32_0, %c0_i32_1, %c0_i32_2 : i32, i32, i32, i32
  }
  func.func @transform_2(%arg0: i32, %arg1: i32) -> (i32, i32, i32, i32) {
    %c0_i32 = arith.constant 0 : i32
    %c0_i32_0 = arith.constant 0 : i32
    %c0_i32_1 = arith.constant 0 : i32
    return %arg0, %arg1, %c0_i32, %c0_i32_0 : i32, i32, i32, i32
  }
  func.func @transform_3(%arg0: i32, %arg1: i32) -> (i32, i32) {
    %c0_i32 = arith.constant 0 : i32
    %c0_i32_0 = arith.constant 0 : i32
    %c0_i32_1 = arith.constant 0 : i32
    return %c0_i32, %c0_i32_0 : i32, i32
  }
}

</mosaic_0001>

<bundles_post_ra>
// kernel: tpu_custom_call.1
= control target key start
LH: loop header
LB: loop body
LE: loop exit
PB: predicated region body
PF: predicated region fallthrough
CT: control target
= control target key end

     0   :  { %9 = vsyncpa [#allocation6], 0  ;;  %s5651_s0 = inlined_call_operand.vmem [shape: f32[2,18,18,128], index: 0, kind: input, shape index: {}]   ;;  %s5652_s1 = inlined_call_operand.vmem [shape: f32[3,3,128,128], index: 1, kind: input, shape index: {}]   ;;  %s5653_s2 = inlined_call_operand.hbm [shape: f32[2,16,16,128], index: 2, kind: output, shape index: {0}]   ;;  %s5654_s3 = inlined_call_operand.hbm [shape: f32[2,128], index: 3, kind: output, shape index: {1}]  }
   0x1   :  { %11 = vsyncpa [#allocation6 + $0x1], 0 }
   0x2   :  { %12 = vsyncpa [#allocation8], 0  ;;  %s4404_s12 = smov 0   ;;  %s4406_s13 = smov 0  }
   0x3   :  { %s4408_s14 = smov 0   ;;  %s4410_s15 = smov 0  }
   0x4   :  { %s4412_s16 = smov 0   ;;  %s4414_s17 = smov 0  }
   0x5   :  { %s4416_s18 = smov 0   ;;  %s4418_s19 = smov 0  }
   0x6 LB: > { %s2756_s20 = sadd.s32 4294967295, %s4377_s19   ;;  %s2757_s21 = sadd.s32 4294967294, %s4377_s19   ;;  %s4377_s19 = sphi %s4418_s19, %s18_s19   ;;  %s4373_s18 = sphi %s4416_s18, %s5671_s18   ;;  %s4369_s17 = sphi %s4414_s17, %s5670_s17   ;;  %s4365_s16 = sphi %s4412_s16, %s5669_s16   ;;  %s4361_s15 = sphi %s4410_s15, %s5668_s15   ;;  %s4357_s14 = sphi %s4408_s14, %s5667_s14   ;;  %s4353_s13 = sphi %s4406_s13, %s5666_s13   ;;  %s4349_s12 = sphi %s4404_s12, %s5665_s12  }
   0x7   : > { %s27_s22 = sadd.s32 1, %s4369_s17  ;;  %s30_s23 = sadd.s32 1, %s4373_s18 }
   0x8   : > { %p28_p0 = scmp.ge.s32.totalorder %s27_s22, 2  ;;  %p70_p1 = scmp.ne.s32.totalorder %s4357_s14, %s4353_s13 }
   0x9   : > { %p4450_p2 = scmp.eq.s32.totalorder %s2756_s20, 3  ;;  %p76_p5 = scmp.ne.s32.totalorder %s4353_s13, %s4349_s12 }
   0xa   : > { %s5673_s22 = smov (%p28_p0, %s27_s22), 0  ;;  %s5675_s23 = smov (!%p28_p0, %s30_s23), %s4373_s18 }
   0xb   : > { %s56_s25 = ssub.s32 %s4369_s17, %s5673_s22  ;;  %p4461_p3 = por %p4450_p2, %p70_p1 }
   0xc   : > { %p32_p4 = scmp.ge.s32.totalorder %s5675_s23, 2  ;;  %p77_p6 = scmp.eq.s32.totalorder %s2757_s21, 3 }
   0xd   : > { %p2759_p7 = scmp.ge.s32.totalorder %s4377_s19, 1  ;;  %p119_p9 = scmp.lt.s32.totalorder %s4377_s19, 5 }
   0xe   : > { %s5677_s23 = smov (%p32_p4, %s5675_s23), 0  ;;  %p4470_p8 = por %p77_p6, %p76_p5 }
   0xf   : > { %5659 = sst [smem:[#allocation14_spill]] %s5677_s23  ;;  %s55_s28 = ssub.s32 %s4373_s18, %s5677_s23 }
  0x10   : > { %s60_s29 = sadd.s32 1, %s4357_s14  ;;  %s57_s30 = sor.u32 %s56_s25, %s55_s28 }
  0x11   : > { %p120_p10 = pnand %p2759_p7, %p119_p9  ;;  %p58_p11 = scmp.eq.s32.totalorder %s57_s30, 0 }
  0x12   : > { %s5655_s5 = sand.u32 (!%p120_p10), 1, %s4353_s13   ;;  %s2761_s6 = sshll.u32 (!%p120_p10), %s4365_s16, 1 }
  0x13   : > { %s4479_s4 = scalar_select %p58_p11, %s4357_s14, %s60_s29  }
  0x14   : > { %123 = sbr.rel (%p120_p10) target bundleno = 547 (0x223), region = 24  ;;  %s2760_s7 = sshll.u32 (!%p120_p10), %s5655_s5, 7 }
  0x15   : > { %s138_s8 = sadd.s32 (!%p120_p10), %s4361_s15, %s2761_s6  ;;  %p140_p12 = scmp.eq.s32.totalorder (!%p120_p10), %s4365_s16, 0 }
  0x16   : > { %s4486_s9 = sand.u32 (!%p120_p10), 1, %s138_s8  ;;  %p141_p13 = scmp.eq.s32.totalorder (!%p120_p10), %s4361_s15, 0 }
  0x17   : > { %p144_p0 = scmp.eq.s32.totalorder (!%p120_p10), %s4365_s16, 1  ;;  %p145_p1 = scmp.eq.s32.totalorder (!%p120_p10), %s4361_s15, 1 }
  0x18   : > { %p4492_p4 = pnand (!%p120_p10), %p141_p13, %p140_p12  ;;  %s4502_s20 = scalar_lea.vmem (!%p120_p10), [#allocation5], %s2760_s7 }
  0x19   : > { %p4498_p5 = pnand (!%p120_p10), %p145_p1, %p144_p0 }
  0x1b   : > { %149 = sbr.rel (%p4492_p4) target bundleno = 51 (0x33), region = 28 }
  0x1c   : > { %s2763_s21 = smul.u32 (!%p4492_p4), 192, %s4361_s15 }
  0x1d   : > { %s152_s25 = smul.u32 (!%p4492_p4), 432, %s4365_s16 }
  0x1e   : > { %s155_s28 = smul.u32 (!%p4492_p4), 240, %s4486_s9 }
  0x1f   : > { %s153_s29 = sadd.s32 (!%p4492_p4), %s2763_s21, %s152_s25  ;;  %s157_s21 = scalar_lea.sflag (!%p4492_p4), [#allocation4], %s4486_s9 }
  0x20   : > { %s4512_s8 = scalar_lea.vmem (!%p4492_p4), %s5651_s0, %s153_s29  ;;  %s4517_s7 = scalar_lea.vmem (!%p4492_p4), [#allocation2], %s155_s28 }
  0x21   : > { %v213_v0 = vld [vmem:[%s4512_s8] sm:$0xff] (!%p4492_p4)  ;;  %v215_v1 = vld [vmem:[%s4512_s8 + $0x8] sm:$0xff] (!%p4492_p4)  ;;  %v217_v2 = vld [vmem:[%s4512_s8 + $0x18] sm:$0xff] (!%p4492_p4) }
  0x22   : > { %214 = vst [vmem:[%s4517_s7] sm:$0xff] %v213_v0  ;;  %216 = vst [vmem:[%s4517_s7 + $0x8] sm:$0xff] %v215_v1  ;;  %v219_v3 = vld [vmem:[%s4512_s8 + $0x20] sm:$0xff]  ;;  %v221_v4 = vld [vmem:[%s4512_s8 + $0x30] sm:$0xff] }
  0x23   : > { %218 = vst [vmem:[%s4517_s7 + $0x18] sm:$0xff] %v217_v2  ;;  %v223_v5 = vld [vmem:[%s4512_s8 + $0x38] sm:$0xff]  ;;  %220 = vst [vmem:[%s4517_s7 + $0x20] sm:$0xff] %v219_v3  ;;  %v225_v6 = vld [vmem:[%s4512_s8 + $0x48] sm:$0xff] }
  0x24   : > { %222 = vst [vmem:[%s4517_s7 + $0x30] sm:$0xff] %v221_v4  ;;  %224 = vst [vmem:[%s4517_s7 + $0x38] sm:$0xff] %v223_v5  ;;  %v227_v7 = vld [vmem:[%s4512_s8 + $0x50] sm:$0xff]  ;;  %v229_v8 = vld [vmem:[%s4512_s8 + $0x60] sm:$0xff] }
  0x25   : > { %226 = vst [vmem:[%s4517_s7 + $0x48] sm:$0xff] %v225_v6  ;;  %228 = vst [vmem:[%s4517_s7 + $0x50] sm:$0xff] %v227_v7  ;;  %v231_v9 = vld [vmem:[%s4512_s8 + $0x68] sm:$0xff]  ;;  %v233_v10 = vld [vmem:[%s4512_s8 + $0x78] sm:$0xff] }
  0x26   : > { %230 = vst [vmem:[%s4517_s7 + $0x60] sm:$0xff] %v229_v8  ;;  %v235_v11 = vld [vmem:[%s4512_s8 + $0x80] sm:$0xff]  ;;  %232 = vst [vmem:[%s4517_s7 + $0x68] sm:$0xff] %v231_v9  ;;  %v237_v12 = vld [vmem:[%s4512_s8 + $0x90] sm:$0xff] }
  0x27   : > { %234 = vst [vmem:[%s4517_s7 + $0x78] sm:$0xff] %v233_v10  ;;  %236 = vst [vmem:[%s4517_s7 + $0x80] sm:$0xff] %v235_v11  ;;  %v239_v13 = vld [vmem:[%s4512_s8 + $0x98] sm:$0xff]  ;;  %v241_v14 = vld [vmem:[%s4512_s8 + $0xa8] sm:$0xff] }
  0x28   : > { %238 = vst [vmem:[%s4517_s7 + $0x90] sm:$0xff] %v237_v12  ;;  %240 = vst [vmem:[%s4517_s7 + $0x98] sm:$0xff] %v239_v13  ;;  %v243_v15 = vld [vmem:[%s4512_s8 + $0xb0] sm:$0xff]  ;;  %v245_v16 = vld [vmem:[%s4512_s8 + $0xc0] sm:$0xff] }
  0x29   : > { %242 = vst [vmem:[%s4517_s7 + $0xa8] sm:$0xff] %v241_v14  ;;  %v247_v17 = vld [vmem:[%s4512_s8 + $0xc8] sm:$0xff]  ;;  %244 = vst [vmem:[%s4517_s7 + $0xb0] sm:$0xff] %v243_v15  ;;  %v249_v18 = vld [vmem:[%s4512_s8 + $0xd8] sm:$0xff] }
  0x2a   : > { %246 = vst [vmem:[%s4517_s7 + $0xc0] sm:$0xff] %v245_v16  ;;  %248 = vst [vmem:[%s4517_s7 + $0xc8] sm:$0xff] %v247_v17  ;;  %v251_v19 = vld [vmem:[%s4512_s8 + $0xe0] sm:$0xff]  ;;  %v2764_v20 = vld [vmem:[%s4512_s8 + $0x10] sm:$0x3] }
  0x2b   : > { %250 = vst [vmem:[%s4517_s7 + $0xd8] sm:$0xff] %v249_v18  ;;  %252 = vst [vmem:[%s4517_s7 + $0xe0] sm:$0xff] %v251_v19  ;;  %v2766_v21 = vld [vmem:[%s4512_s8 + $0x28] sm:$0x3]  ;;  %v2768_v22 = vld [vmem:[%s4512_s8 + $0x40] sm:$0x3] }
  0x2c   : > { %2765 = vst [vmem:[%s4517_s7 + $0x10] sm:$0x3] %v2764_v20  ;;  %v2770_v23 = vld [vmem:[%s4512_s8 + $0x58] sm:$0x3]  ;;  %2767 = vst [vmem:[%s4517_s7 + $0x28] sm:$0x3] %v2766_v21 }
  0x2d   : > { %2769 = vst [vmem:[%s4517_s7 + $0x40] sm:$0x3] %v2768_v22  ;;  %2771 = vst [vmem:[%s4517_s7 + $0x58] sm:$0x3] %v2770_v23  ;;  %v2772_v24 = vld [vmem:[%s4512_s8 + $0x70] sm:$0x3] }
  0x2e   : > { %v2774_v25 = vld [vmem:[%s4512_s8 + $0x88] sm:$0x3]  ;;  %v2776_v26 = vld [vmem:[%s4512_s8 + $0xa0] sm:$0x3]  ;;  %2773 = vst [vmem:[%s4517_s7 + $0x70] sm:$0x3] %v2772_v24 }
  0x2f   : > { %2775 = vst [vmem:[%s4517_s7 + $0x88] sm:$0x3] %v2774_v25  ;;  %2777 = vst [vmem:[%s4517_s7 + $0xa0] sm:$0x3] %v2776_v26  ;;  %v2778_v27 = vld [vmem:[%s4512_s8 + $0xb8] sm:$0x3] }
  0x30   : > { %v2780_v28 = vld [vmem:[%s4512_s8 + $0xd0] sm:$0x3]  ;;  %v2782_v29 = vld [vmem:[%s4512_s8 + $0xe8] sm:$0x3]  ;;  %2779 = vst [vmem:[%s4517_s7 + $0xb8] sm:$0x3] %v2778_v27 }
  0x31   : > { %2781 = vst [vmem:[%s4517_s7 + $0xd0] sm:$0x3] %v2780_v28  ;;  %2783 = vst [vmem:[%s4517_s7 + $0xe8] sm:$0x3] %v2782_v29 }
  0x32   : > { %285 = vsyncadd %s157_s21, 2880 }
  0x33 PF: > { %s287_s25 = smul.u32 240, %s4486_s9  ;;  %s289_s29 = scalar_lea.sflag [#allocation4], %s4486_s9 }
  0x35   : > { %s4578_s28 = scalar_lea.vmem [#allocation2], %s287_s25 }
  0x36   : > { %4337 = dma.done.wait %s289_s29, 2880 }
  0x37   : > { %4338 = vsyncadd %s289_s29, 4294964416  ;;  %296 = sbr.rel (!%p4498_p5) target bundleno = 86 (0x56), region = 69  ;;  %s297_s30 = sadd.s32 (%p4498_p5), 1, %s4361_s15 }
  0x38   : > { %s299_s6 = sadd.s32 (%p4498_p5), 1, %s4365_s16  ;;  %s301_s8 = ssub.s32 (%p4498_p5), 1, %s4486_s9 }
  0x39   : > { %s307_s25 = smul.u32 (%p4498_p5), 240, %s301_s8  ;;  %s309_s5 = scalar_lea.sflag (%p4498_p5), [#allocation4], %s301_s8 }
  0x3e   : > { %s5679_s30 = smov (%p145_p1, %s297_s30), 0  ;;  %s5681_s6 = smov (!%p145_p1, %s299_s6), %s4365_s16 }
  0x3f   : > { %s2785_s7 = smul.u32 192, %s5679_s30  ;;  %s4601_s30 = scalar_lea.vmem [#allocation2], %s307_s25 }
  0x40   : > { %s304_s21 = smul.u32 432, %s5681_s6 }
  0x42   : > { %s305_s11 = sadd.s32 %s2785_s7, %s304_s21 }
  0x43   : > { %s4596_s23 = scalar_lea.vmem %s5651_s0, %s305_s11 }
  0x44   : > { %v365_v30 = vld [vmem:[%s4596_s23] sm:$0xff]  ;;  %v367_v31 = vld [vmem:[%s4596_s23 + $0x8] sm:$0xff]  ;;  %v369_v32 = vld [vmem:[%s4596_s23 + $0x18] sm:$0xff] }
  0x45   : > { %366 = vst [vmem:[%s4601_s30] sm:$0xff] %v365_v30  ;;  %368 = vst [vmem:[%s4601_s30 + $0x8] sm:$0xff] %v367_v31  ;;  %v371_v33 = vld [vmem:[%s4596_s23 + $0x20] sm:$0xff]  ;;  %v373_v34 = vld [vmem:[%s4596_s23 + $0x30] sm:$0xff] }
  0x46   : > { %370 = vst [vmem:[%s4601_s30 + $0x18] sm:$0xff] %v369_v32  ;;  %v375_v35 = vld [vmem:[%s4596_s23 + $0x38] sm:$0xff]  ;;  %372 = vst [vmem:[%s4601_s30 + $0x20] sm:$0xff] %v371_v33  ;;  %v377_v36 = vld [vmem:[%s4596_s23 + $0x48] sm:$0xff] }
  0x47   : > { %374 = vst [vmem:[%s4601_s30 + $0x30] sm:$0xff] %v373_v34  ;;  %376 = vst [vmem:[%s4601_s30 + $0x38] sm:$0xff] %v375_v35  ;;  %v379_v37 = vld [vmem:[%s4596_s23 + $0x50] sm:$0xff]  ;;  %v381_v38 = vld [vmem:[%s4596_s23 + $0x60] sm:$0xff] }
  0x48   : > { %378 = vst [vmem:[%s4601_s30 + $0x48] sm:$0xff] %v377_v36  ;;  %380 = vst [vmem:[%s4601_s30 + $0x50] sm:$0xff] %v379_v37  ;;  %v383_v39 = vld [vmem:[%s4596_s23 + $0x68] sm:$0xff]  ;;  %v385_v40 = vld [vmem:[%s4596_s23 + $0x78] sm:$0xff] }
  0x49   : > { %382 = vst [vmem:[%s4601_s30 + $0x60] sm:$0xff] %v381_v38  ;;  %v387_v41 = vld [vmem:[%s4596_s23 + $0x80] sm:$0xff]  ;;  %384 = vst [vmem:[%s4601_s30 + $0x68] sm:$0xff] %v383_v39  ;;  %v389_v42 = vld [vmem:[%s4596_s23 + $0x90] sm:$0xff] }
  0x4a   : > { %386 = vst [vmem:[%s4601_s30 + $0x78] sm:$0xff] %v385_v40  ;;  %388 = vst [vmem:[%s4601_s30 + $0x80] sm:$0xff] %v387_v41  ;;  %v391_v43 = vld [vmem:[%s4596_s23 + $0x98] sm:$0xff]  ;;  %v393_v44 = vld [vmem:[%s4596_s23 + $0xa8] sm:$0xff] }
  0x4b   : > { %390 = vst [vmem:[%s4601_s30 + $0x90] sm:$0xff] %v389_v42  ;;  %392 = vst [vmem:[%s4601_s30 + $0x98] sm:$0xff] %v391_v43  ;;  %v395_v45 = vld [vmem:[%s4596_s23 + $0xb0] sm:$0xff]  ;;  %v397_v46 = vld [vmem:[%s4596_s23 + $0xc0] sm:$0xff] }
  0x4c   : > { %394 = vst [vmem:[%s4601_s30 + $0xa8] sm:$0xff] %v393_v44  ;;  %v399_v47 = vld [vmem:[%s4596_s23 + $0xc8] sm:$0xff]  ;;  %396 = vst [vmem:[%s4601_s30 + $0xb0] sm:$0xff] %v395_v45  ;;  %v401_v48 = vld [vmem:[%s4596_s23 + $0xd8] sm:$0xff] }
  0x4d   : > { %398 = vst [vmem:[%s4601_s30 + $0xc0] sm:$0xff] %v397_v46  ;;  %400 = vst [vmem:[%s4601_s30 + $0xc8] sm:$0xff] %v399_v47  ;;  %v403_v49 = vld [vmem:[%s4596_s23 + $0xe0] sm:$0xff]  ;;  %v2786_v50 = vld [vmem:[%s4596_s23 + $0x10] sm:$0x3] }
  0x4e   : > { %402 = vst [vmem:[%s4601_s30 + $0xd8] sm:$0xff] %v401_v48  ;;  %404 = vst [vmem:[%s4601_s30 + $0xe0] sm:$0xff] %v403_v49  ;;  %v2788_v51 = vld [vmem:[%s4596_s23 + $0x28] sm:$0x3]  ;;  %v2790_v52 = vld [vmem:[%s4596_s23 + $0x40] sm:$0x3] }
  0x4f   : > { %2787 = vst [vmem:[%s4601_s30 + $0x10] sm:$0x3] %v2786_v50  ;;  %v2792_v53 = vld [vmem:[%s4596_s23 + $0x58] sm:$0x3]  ;;  %2789 = vst [vmem:[%s4601_s30 + $0x28] sm:$0x3] %v2788_v51 }
  0x50   : > { %2791 = vst [vmem:[%s4601_s30 + $0x40] sm:$0x3] %v2790_v52  ;;  %2793 = vst [vmem:[%s4601_s30 + $0x58] sm:$0x3] %v2792_v53  ;;  %v2794_v54 = vld [vmem:[%s4596_s23 + $0x70] sm:$0x3] }
  0x51   : > { %v2796_v55 = vld [vmem:[%s4596_s23 + $0x88] sm:$0x3]  ;;  %v2798_v56 = vld [vmem:[%s4596_s23 + $0xa0] sm:$0x3]  ;;  %2795 = vst [vmem:[%s4601_s30 + $0x70] sm:$0x3] %v2794_v54 }
  0x52   : > { %2797 = vst [vmem:[%s4601_s30 + $0x88] sm:$0x3] %v2796_v55  ;;  %2799 = vst [vmem:[%s4601_s30 + $0xa0] sm:$0x3] %v2798_v56  ;;  %v2800_v57 = vld [vmem:[%s4596_s23 + $0xb8] sm:$0x3] }
  0x53   : > { %v2802_v58 = vld [vmem:[%s4596_s23 + $0xd0] sm:$0x3]  ;;  %v2804_v59 = vld [vmem:[%s4596_s23 + $0xe8] sm:$0x3]  ;;  %2801 = vst [vmem:[%s4601_s30 + $0xb8] sm:$0x3] %v2800_v57 }
  0x54   : > { %2803 = vst [vmem:[%s4601_s30 + $0xd0] sm:$0x3] %v2802_v58  ;;  %2805 = vst [vmem:[%s4601_s30 + $0xe8] sm:$0x3] %v2804_v59 }
  0x55   : > { %437 = vsyncadd %s309_s5, 2880 }
  0x56 PF: > { %439 = sbr.rel (%p4492_p4) target bundleno = 93 (0x5d), region = 110  ;;  %v4379_v60 = vmov (!%p4492_p4), 0.0  }
  0x57   : > { %440 = vst [vmem:[#allocation7] sm:$0x3] (!%p4492_p4), %v4379_v60 }
  0x5d PF: > { %v471_v61 = vld [vmem:[%s5652_s1] sm:$0xff]  ;;  %v472_v62 = vld [vmem:[%s5652_s1 + $0x8] sm:$0xff]  ;;  %v473_v2 = vld [vmem:[%s5652_s1 + $0x10] sm:$0xff]  ;;  %vm672_vm0 = vcmask 1046528   ;;  %vm939_vm1 = vcmask 1045504   ;;  %s2937_s6 = sshll.u32 %s4365_s16, 5 }
  0x5e   : > { %v2854_v63 = vld [vmem:[%s5652_s1 + $0x200] sm:$0xff]  ;;  %v3738_v0 = vpack.c.bf16 %v472_v62, %v471_v61  ;;  %v2855_v1 = vld [vmem:[%s5652_s1 + $0x208] sm:$0xff]  ;;  %v474_v3 = vld [vmem:[%s5652_s1 + $0x18] sm:$0xff]  ;;  %s2612_s16 = sshll.u32 %s4502_s20, 4  ;;  %s5663_s11 = sand.u32 1, %s4353_s13   ;;  %s5537_s16 = int_to_ptr.vmem [resolvable:$true] %s2612_s16 }
  0x5f   : > { %v3866_v4 = vpack.c.bf16 %v2855_v1, %v2854_v63  ;;  %v3742_v5 = vpack.c.bf16 %v474_v3, %v473_v2  ;;  %v2856_v6 = vld [vmem:[%s5652_s1 + $0x210] sm:$0xff]  ;;  %v2857_v7 = vld [vmem:[%s5652_s1 + $0x218] sm:$0xff]  ;;  %v475_v8 = vld [vmem:[%s5652_s1 + $0x20] sm:$0xff]  ;;  %s5553_s9 = scalar_lea.sflag [#allocation6], %s5663_s11  ;;  %s4251_s8 = scalar_lea.vmem %s5537_s16, 2048 }
  0x60   : > { %3739 = vmatprep.subr.bf16.mxu1 %v3738_v0  ;;  %v3870_v9 = vpack.c.bf16 %v2857_v7, %v2856_v6  ;;  %v476_v10 = vld [vmem:[%s5652_s1 + $0x28] sm:$0xff]  ;;  %v2858_v11 = vld [vmem:[%s5652_s1 + $0x220] sm:$0xff]  ;;  %v477_v15 = vld [vmem:[%s5652_s1 + $0x30] sm:$0xff]  ;;  %p4252_p6 = scmp.ne.s32.totalorder %s5537_s16, %s4251_s8  ;;  %s4380_s10 = smov [#allocation5]  }
  0x61   : > { %v2859_v12 = vld [vmem:[%s5652_s1 + $0x228] sm:$0xff]  ;;  %3867 = vmatprep.subr.bf16.mxu0 %v3866_v4  ;;  %3741 = vmatpush3.bf16.msra.mxu1 %v3738_v0  ;;  %v3746_v13 = vpack.c.bf16 %v476_v10, %v475_v8  ;;  %v478_v16 = vld [vmem:[%s5652_s1 + $0x38] sm:$0xff]  ;;  %v2860_v17 = vld [vmem:[%s5652_s1 + $0x230] sm:$0xff]  ;;  %s4255_s29 = sshll.u32 %s4380_s10, 4  ;;  %s4256_s29 = int_to_ptr.vmem [resolvable:$false] %s4255_s29 }
  0x62   : > { %3869 = vmatpush3.bf16.msra.mxu0 %v3866_v4  ;;  %3743 = vmatprep.subr.bf16.mxu1 %v3742_v5  ;;  %v3874_v14 = vpack.c.bf16 %v2859_v12, %v2858_v11  ;;  %v2861_v18 = vld [vmem:[%s5652_s1 + $0x238] sm:$0xff]  ;;  %v3750_v19 = vpack.c.bf16 %v478_v16, %v477_v15  ;;  %v479_v20 = vld [vmem:[%s5652_s1 + $0x40] sm:$0xff]  ;;  %v480_v22 = vld [vmem:[%s5652_s1 + $0x48] sm:$0xff]  ;;  %p4253_p7 = pnand %p4252_p6, %p4461_p3  ;;  %s4257_s30 = scalar_lea.vmem %s4256_s29, 4096 }
  0x63   : > { %3871 = vmatprep.subr.bf16.mxu0 %v3870_v9  ;;  %v3878_v21 = vpack.c.bf16 %v2861_v18, %v2860_v17  ;;  %v2862_v23 = vld [vmem:[%s5652_s1 + $0x240] sm:$0xff]  ;;  %v2863_v25 = vld [vmem:[%s5652_s1 + $0x248] sm:$0xff]  ;;  %v3754_v30 = vpack.c.bf16 %v480_v22, %v479_v20  ;;  %v481_v32 = vld [vmem:[%s5652_s1 + $0x50] sm:$0xff]  ;;  %p4258_p10 = scmp.lt.s32.totalorder %s5537_s16, %s4256_s29  ;;  %p4259_p11 = scmp.lt.s32.totalorder %s4257_s30, %s4251_s8 }
  0x64   : > { %v4722_v24 = vld [vmem:[%s4578_s28] sm:$0xff]  ;;  %v4729_v26 = vld [vmem:[%s4578_s28 + $0x18] sm:$0xff]  ;;  %v3882_v31 = vpack.c.bf16 %v2863_v25, %v2862_v23  ;;  %v4785_v53 = vld [vmem:[%s4578_s28 + $0x28] sm:$0x3]  ;;  %p4254_p9 = pneg %p4253_p7 }
  0x65   : > { %3745 = vmatpush3.bf16.msra.mxu1 %v3742_v5  ;;  %3266 = vmatprep.mubr.f32.mxu1 %v4722_v24  ;;  %v4732_v27 = vld [vmem:[%s4578_s28 + $0x20] sm:$0xff]  ;;  %v678_v28 = vrot.slane %v4729_v26, 1  ;;  %v482_v33 = vld [vmem:[%s5652_s1 + $0x58] sm:$0xff]  ;;  %v484_v40 = vld [vmem:[%s5652_s1 + $0x68] sm:$0xff]  ;;  %v681_v59 = vrot.slane %v4785_v53, 1  ;;  %p4260_p12 = por %p4259_p11, %p4258_p10 }
  0x66   : > { %3873 = vmatpush3.bf16.msra.mxu0 %v3870_v9  ;;  %3747 = vmatprep.subr.bf16.mxu1 %v3746_v13  ;;  %v679_v29 = vrot.slane %v4732_v27, 1  ;;  %v2864_v35 = vld [vmem:[%s5652_s1 + $0x250] sm:$0xff]  ;;  %v2865_v36 = vld [vmem:[%s5652_s1 + $0x258] sm:$0xff]  ;;  %v3758_v37 = vpack.c.bf16 %v482_v33, %v481_v32  ;;  %v483_v39 = vld [vmem:[%s5652_s1 + $0x60] sm:$0xff] }
  0x67   : > { %3875 = vmatprep.subr.bf16.mxu0 %v3874_v14  ;;  %v3886_v38 = vpack.c.bf16 %v2865_v36, %v2864_v35  ;;  %v2866_v41 = vld [vmem:[%s5652_s1 + $0x260] sm:$0xff]  ;;  %v2867_v42 = vld [vmem:[%s5652_s1 + $0x268] sm:$0xff]  ;;  %v3762_v43 = vpack.c.bf16 %v484_v40, %v483_v39  ;;  %v485_v45 = vld [vmem:[%s5652_s1 + $0x70] sm:$0xff]  ;;  %p4261_p13 = pnand %p4260_p12, %p4254_p9 }
  0x68   : > { %v4745_v34 = vsel %vm672_vm0, %v678_v28, %v679_v29  ;;  %v3890_v44 = vpack.c.bf16 %v2867_v42, %v2866_v41  ;;  %v486_v46 = vld [vmem:[%s5652_s1 + $0x78] sm:$0xff]  ;;  %v2868_v47 = vld [vmem:[%s5652_s1 + $0x270] sm:$0xff]  ;;  %v2806_v51 = vld [vmem:[%s5652_s1 + $0x80] sm:$0xff]  ;;  %v4829_v7 = vsel %vm672_vm0, %v679_v29, %v681_v59 }
  0x69   : > { %3749 = vmatpush3.bf16.msra.mxu1 %v3746_v13  ;;  %3490 = vmatprep.mubr.f32.mxu0 %v4745_v34  ;;  %v2869_v48 = vld [vmem:[%s5652_s1 + $0x278] sm:$0xff]  ;;  %v3766_v49 = vpack.c.bf16 %v486_v46, %v485_v45  ;;  %v2807_v52 = vld [vmem:[%s5652_s1 + $0x88] sm:$0xff]  ;;  %v2870_v54 = vld [vmem:[%s5652_s1 + $0x280] sm:$0xff] }
  0x6a   : > { %3877 = vmatpush3.bf16.msra.mxu0 %v3874_v14  ;;  %3751 = vmatprep.subr.bf16.mxu1 %v3750_v19  ;;  %v3894_v50 = vpack.c.bf16 %v2869_v48, %v2868_v47  ;;  %v2871_v55 = vld [vmem:[%s5652_s1 + $0x288] sm:$0xff]  ;;  %v4794_v56 = vld [vmem:[%s4578_s28 + $0x30] sm:$0xff]  ;;  %v3770_v58 = vpack.c.bf16 %v2807_v52, %v2806_v51  ;;  %v4804_v62 = vld [vmem:[%s4578_s28 + $0x40] sm:$0x3] }
  0x6b   : > { %3879 = vmatprep.subr.bf16.mxu0 %v3878_v21  ;;  %v4797_v57 = vld [vmem:[%s4578_s28 + $0x38] sm:$0xff]  ;;  %v4801_v60 = vld [vmem:[%s4578_s28 + $0x8] sm:$0xff]  ;;  %v3898_v61 = vpack.c.bf16 %v2871_v55, %v2870_v54  ;;  %v683_v63 = vrot.slane %v4794_v56, 1  ;;  %v2808_v1 = vld [vmem:[%s5652_s1 + $0x90] sm:$0xff]  ;;  %v686_v8 = vrot.slane %v4804_v62, 1 }
  0x6c   : > { %v684_v0 = vrot.slane %v4797_v57, 1  ;;  %v2809_v2 = vld [vmem:[%s5652_s1 + $0x98] sm:$0xff]  ;;  %v2872_v3 = vld [vmem:[%s5652_s1 + $0x290] sm:$0xff]  ;;  %v2810_v15 = vld [vmem:[%s5652_s1 + $0xa0] sm:$0xff] }
  0x6d   : > { %3753 = vmatpush3.bf16.msra.mxu1 %v3750_v19  ;;  %v2873_v4 = vld [vmem:[%s5652_s1 + $0x298] sm:$0xff]  ;;  %v4824_v6 = vld [vmem:[%s4578_s28 + $0x50] sm:$0xff]  ;;  %v3774_v9 = vpack.c.bf16 %v2809_v2, %v2808_v1  ;;  %v2811_v16 = vld [vmem:[%s5652_s1 + $0xa8] sm:$0xff] }
  0x6e   : > { %3881 = vmatpush3.bf16.msra.mxu0 %v3878_v21  ;;  %3755 = vmatprep.subr.bf16.mxu1 %v3754_v30  ;;  %v4821_v5 = vld [vmem:[%s4578_s28 + $0x48] sm:$0xff]  ;;  %v4833_v10 = vld [vmem:[%s4578_s28 + $0x58] sm:$0x3]  ;;  %v4837_v11 = vsel %vm672_vm0, %v683_v63, %v684_v0  ;;  %v3902_v12 = vpack.c.bf16 %v2873_v4, %v2872_v3  ;;  %v689_v14 = vrot.slane %v4824_v6, 1  ;;  %v2874_v17 = vld [vmem:[%s5652_s1 + $0x2a0] sm:$0xff]  ;;  %v4862_v21 = vsel %vm672_vm0, %v684_v0, %v686_v8 }
  0x6f   : > { %3883 = vmatprep.subr.bf16.mxu0 %v3882_v31  ;;  %v688_v13 = vrot.slane %v4821_v5, 1  ;;  %v2875_v18 = vld [vmem:[%s5652_s1 + $0x2a8] sm:$0xff]  ;;  %v4855_v19 = vld [vmem:[%s4578_s28 + $0x60] sm:$0xff]  ;;  %v691_v22 = vrot.slane %v4833_v10, 1  ;;  %v3778_v23 = vpack.c.bf16 %v2811_v16, %v2810_v15  ;;  %v4867_v25 = vld [vmem:[%s4578_s28 + $0x70] sm:$0x3] }
  0x70   : > { %v4858_v20 = vld [vmem:[%s4578_s28 + $0x68] sm:$0xff]  ;;  %v3906_v29 = vpack.c.bf16 %v2875_v18, %v2874_v17  ;;  %v2812_v32 = vld [vmem:[%s5652_s1 + $0xb0] sm:$0xff]  ;;  %v696_v40 = vrot.slane %v4867_v25, 1  ;;  %v2814_v47 = vld [vmem:[%s5652_s1 + $0xc0] sm:$0xff] }
  0x71   : > { %3757 = vmatpush3.bf16.msra.mxu1 %v3754_v30  ;;  %v4871_v28 = vsel %vm672_vm0, %v688_v13, %v689_v14  ;;  %v693_v30 = vrot.slane %v4855_v19, 1  ;;  %v2813_v33 = vld [vmem:[%s5652_s1 + $0xb8] sm:$0xff]  ;;  %v2876_v35 = vld [vmem:[%s5652_s1 + $0x2b0] sm:$0xff]  ;;  %v4896_v39 = vsel %vm672_vm0, %v689_v14, %v691_v22  ;;  %v2815_v48 = vld [vmem:[%s5652_s1 + $0xc8] sm:$0xff] }
  0x72   : > { %3885 = vmatpush3.bf16.msra.mxu0 %v3882_v31  ;;  %3759 = vmatprep.subr.bf16.mxu1 %v3758_v37  ;;  %v694_v31 = vrot.slane %v4858_v20, 1  ;;  %v2877_v36 = vld [vmem:[%s5652_s1 + $0x2b8] sm:$0xff]  ;;  %v3782_v41 = vpack.c.bf16 %v2813_v33, %v2812_v32  ;;  %v4923_v51 = vld [vmem:[%s4578_s28 + $0x90] sm:$0xff]  ;;  %v4935_v59 = vld [vmem:[%s4578_s28 + $0xa0] sm:$0x3] }
  0x73   : > { %3887 = vmatprep.subr.bf16.mxu0 %v3886_v38  ;;  %v4901_v42 = vld [vmem:[%s4578_s28 + $0x88] sm:$0x3]  ;;  %v4926_v52 = vld [vmem:[%s4578_s28 + $0x98] sm:$0xff]  ;;  %v703_v0 = vrot.slane %v4923_v51, 1  ;;  %v2816_v2 = vld [vmem:[%s5652_s1 + $0xd0] sm:$0xff]  ;;  %v706_v14 = vrot.slane %v4935_v59, 1 }
  0x74   : > { %v4930_v54 = vsel %vm672_vm0, %v694_v31, %v696_v40  ;;  %v701_v55 = vrot.slane %v4901_v42, 1  ;;  %v704_v1 = vrot.slane %v4926_v52, 1  ;;  %v2817_v3 = vld [vmem:[%s5652_s1 + $0xd8] sm:$0xff]  ;;  %v2880_v4 = vld [vmem:[%s5652_s1 + $0x2d0] sm:$0xff]  ;;  %v2883_v32 = vld [vmem:[%s5652_s1 + $0x2e8] sm:$0xff] }
  0x75   : > { %3761 = vmatpush3.bf16.msra.mxu1 %v3758_v37  ;;  %v4889_v37 = vld [vmem:[%s4578_s28 + $0x78] sm:$0xff]  ;;  %v3790_v15 = vpack.c.bf16 %v2817_v3, %v2816_v2  ;;  %v4991_v33 = vld [vmem:[%s4578_s28 + $0xc0] sm:$0xff]  ;;  %v673_v2 = vrot.slane %v4722_v24, 1  ;;  %v674_v3 = vrot.slane %v4801_v60, 1 }
  0x76   : > { %3889 = vmatpush3.bf16.msra.mxu0 %v3886_v38  ;;  %3763 = vmatprep.subr.bf16.mxu1 %v3762_v43  ;;  %v4892_v38 = vld [vmem:[%s4578_s28 + $0x80] sm:$0xff]  ;;  %v698_v45 = vrot.slane %v4889_v37, 1  ;;  %v2881_v8 = vld [vmem:[%s5652_s1 + $0x2d8] sm:$0xff]  ;;  %v4973_v17 = vsel %vm672_vm0, %v703_v0, %v704_v1 }
  0x77   : > { %3891 = vmatprep.subr.bf16.mxu0 %v3890_v44  ;;  %v699_v46 = vrot.slane %v4892_v38, 1  ;;  %v4969_v16 = vld [vmem:[%s4578_s28 + $0xb8] sm:$0x3]  ;;  %v3918_v18 = vpack.c.bf16 %v2881_v8, %v2880_v4 }
  0x78   : > { %v711_v40 = vrot.slane %v4969_v16, 1 }
  0x79   : > { %3765 = vmatpush3.bf16.msra.mxu1 %v3762_v43  ;;  %v4905_v43 = vsel %vm672_vm0, %v693_v30, %v694_v31  ;;  %v4964_v13 = vsel %vm672_vm0, %v699_v46, %v701_v55  ;;  %v2819_v30 = vld [vmem:[%s5652_s1 + $0xe8] sm:$0xff]  ;;  %v2882_v31 = vld [vmem:[%s5652_s1 + $0x2e0] sm:$0xff]  ;;  %v2884_v55 = vld [vmem:[%s5652_s1 + $0x2f0] sm:$0xff] }
  0x7a   : > { %3893 = vmatpush3.bf16.msra.mxu0 %v3890_v44  ;;  %3767 = vmatprep.subr.bf16.mxu1 %v3766_v49  ;;  %v3910_v44 = vpack.c.bf16 %v2877_v36, %v2876_v35  ;;  %v4994_v35 = vld [vmem:[%s4578_s28 + $0xc8] sm:$0xff]  ;;  %v4998_v36 = vsel %vm672_vm0, %v704_v1, %v706_v14  ;;  %v5030_v1 = vld [vmem:[%s4578_s28 + $0x10] sm:$0x3] }
  0x7b   : > { %3895 = vmatprep.subr.bf16.mxu0 %v3894_v50 }
  0x7d   : > { %3769 = vmatpush3.bf16.msra.mxu1 %v3766_v49  ;;  %v2878_v49 = vld [vmem:[%s5652_s1 + $0x2c0] sm:$0xff] }
  0x7e   : > { %3897 = vmatpush3.bf16.msra.mxu0 %v3894_v50  ;;  %3771 = vmatprep.subr.bf16.mxu1 %v3770_v58  ;;  %v2879_v50 = vld [vmem:[%s5652_s1 + $0x2c8] sm:$0xff] }
  0x7f   : > { %3899 = vmatprep.subr.bf16.mxu0 %v3898_v61  ;;  %v3914_v63 = vpack.c.bf16 %v2879_v50, %v2878_v49  ;;  %v2820_v49 = vld [vmem:[%s5652_s1 + $0xf0] sm:$0xff]  ;;  %v2821_v50 = vld [vmem:[%s5652_s1 + $0xf8] sm:$0xff] }
  0x80   : > { %3267 = vmatmul.mubr.f32.vlgmr.msra.gmra.mrb[0].mxu1 %v4801_v60  ;;  %v3798_v4 = vpack.c.bf16 %v2821_v50, %v2820_v49 }
  0x81   : > { %3491 = vmatmul.mubr.f32.vlgmr.msra.gmra.mrb[0].mxu0 %v4829_v7  ;;  %3773 = vmatpush3.bf16.msra.mxu1 %v3770_v58  ;;  %v3786_v58 = vpack.c.bf16 %v2815_v48, %v2814_v47  ;;  %v1419_v47 = vrot.slane %v4991_v33, 1  ;;  %v1420_v48 = vrot.slane %v4994_v35, 1 }
  0x82   : > { %3901 = vmatpush3.bf16.msra.mxu0 %v3898_v61  ;;  %3269 = vmatprep.mubr.f32.mxu1 %v4729_v26  ;;  %v4939_v61 = vsel %vm672_vm0, %v698_v45, %v699_v46  ;;  %v3922_v46 = vpack.c.bf16 %v2883_v32, %v2882_v31  ;;  %v2887_v31 = vld [vmem:[%s5652_s1 + $0x308] sm:$0xff]  ;;  %v948_v32 = vrot.slane %v4785_v53, 2  ;;  %v950_v53 = vrot.slane %v4794_v56, 2 }
  0x83   : > { %3493 = vmatprep.mubr.f32.mxu0 %v4837_v11  ;;  %3775 = vmatprep.subr.bf16.mxu1 %v3774_v9  ;;  %v5037_v8 = vsel %vm672_vm0, %v1419_v47, %v1420_v48 }
  0x84   : > { %3270 = vmatmul.mubr.f32.gmra.mrb[2].mxu1 %v4732_v27  ;;  %3903 = vmatprep.subr.bf16.mxu0 %v3902_v12 }
  0x85   : > { %3494 = vmatmul.mubr.f32.gmra.mrb[2].mxu0 %v4862_v21  ;;  %3777 = vmatpush3.bf16.msra.mxu1 %v3774_v9  ;;  %v4957_v9 = vld [vmem:[%s4578_s28 + $0xa8] sm:$0xff] }
  0x86   : > { %3905 = vmatpush3.bf16.msra.mxu0 %v3902_v12  ;;  %3272 = vmatprep.mubr.f32.mxu1 %v4794_v56  ;;  %v4960_v12 = vld [vmem:[%s4578_s28 + $0xb0] sm:$0xff]  ;;  %v708_v22 = vrot.slane %v4957_v9, 1 }
  0x87   : > { %3496 = vmatprep.mubr.f32.mxu0 %v4871_v28  ;;  %3779 = vmatprep.subr.bf16.mxu1 %v3778_v23 }
  0x88   : > { %3273 = vmatmul.mubr.f32.gmra.mrb[4].mxu1 %v4797_v57  ;;  %3907 = vmatprep.subr.bf16.mxu0 %v3906_v29 }
  0x89   : > { %3497 = vmatmul.mubr.f32.gmra.mrb[4].mxu0 %v4896_v39  ;;  %3781 = vmatpush3.bf16.msra.mxu1 %v3778_v23  ;;  %v709_v23 = vrot.slane %v4960_v12, 1 }
  0x8a   : > { %3909 = vmatpush3.bf16.msra.mxu0 %v3906_v29  ;;  %3275 = vmatprep.mubr.f32.mxu1 %v4821_v5  ;;  %v2818_v29 = vld [vmem:[%s5652_s1 + $0xe0] sm:$0xff] }
  0x8b   : > { %3499 = vmatprep.mubr.f32.mxu0 %v4905_v43  ;;  %3783 = vmatprep.subr.bf16.mxu1 %v3782_v41  ;;  %v5007_v45 = vsel %vm672_vm0, %v708_v22, %v709_v23  ;;  %v2822_v22 = vld [vmem:[%s5652_s1 + $0x100] sm:$0xff] }
  0x8c   : > { %3276 = vmatmul.mubr.f32.gmra.mrb[6].mxu1 %v4824_v6  ;;  %3911 = vmatprep.subr.bf16.mxu0 %v3910_v44 }
  0x8d   : > { %3500 = vmatmul.mubr.f32.gmra.mrb[6].mxu0 %v4930_v54  ;;  %3785 = vmatpush3.bf16.msra.mxu1 %v3782_v41  ;;  %v3794_v41 = vpack.c.bf16 %v2819_v30, %v2818_v29  ;;  %v676_v29 = vrot.slane %v5030_v1, 1  ;;  %v2886_v30 = vld [vmem:[%s5652_s1 + $0x300] sm:$0xff] }
  0x8e   : > { %3913 = vmatpush3.bf16.msra.mxu0 %v3910_v44  ;;  %3278 = vmatprep.mubr.f32.mxu1 %v4855_v19  ;;  %v5003_v44 = vld [vmem:[%s4578_s28 + $0xd0] sm:$0x3]  ;;  %v3930_v50 = vpack.c.bf16 %v2887_v31, %v2886_v30  ;;  %v2891_v31 = vld [vmem:[%s5652_s1 + $0x328] sm:$0xff] }
  0x8f   : > { %3502 = vmatprep.mubr.f32.mxu0 %v4939_v61  ;;  %3787 = vmatprep.subr.bf16.mxu1 %v3786_v58  ;;  %v1422_v0 = vrot.slane %v5003_v44, 1  ;;  %v2890_v30 = vld [vmem:[%s5652_s1 + $0x320] sm:$0xff] }
  0x90   : > { %3279 = vmatmul.mubr.f32.gmra.mrb[8].mxu1 %v4858_v20  ;;  %3915 = vmatprep.subr.bf16.mxu0 %v3914_v63 }
  0x91   : > { %3503 = vmatmul.mubr.f32.gmra.mrb[8].mxu0 %v4964_v13  ;;  %3789 = vmatpush3.bf16.msra.mxu1 %v3786_v58  ;;  %v2885_v58 = vld [vmem:[%s5652_s1 + $0x2f8] sm:$0xff] }
  0x92   : > { %3917 = vmatpush3.bf16.msra.mxu0 %v3914_v63  ;;  %3281 = vmatprep.mubr.f32.mxu1 %v4889_v37  ;;  %v5026_v63 = vsel %vm672_vm0, %v709_v23, %v711_v40  ;;  %v3926_v14 = vpack.c.bf16 %v2885_v58, %v2884_v55  ;;  %v2823_v23 = vld [vmem:[%s5652_s1 + $0x108] sm:$0xff]  ;;  %v5058_v40 = vsel %vm672_vm0, %v1420_v48, %v1422_v0  ;;  %v2824_v48 = vld [vmem:[%s5652_s1 + $0x110] sm:$0xff]  ;;  %v2825_v55 = vld [vmem:[%s5652_s1 + $0x118] sm:$0xff] }
  0x93   : > { %3505 = vmatprep.mubr.f32.mxu0 %v4973_v17  ;;  %3791 = vmatprep.subr.bf16.mxu1 %v3790_v15  ;;  %v3802_v47 = vpack.c.bf16 %v2823_v23, %v2822_v22  ;;  %v677_v58 = vsel %vm672_vm0, %v674_v3, %v676_v29  ;;  %v2888_v0 = vld [vmem:[%s5652_s1 + $0x310] sm:$0xff]  ;;  %v953_v22 = vrot.slane %v4804_v62, 2  ;;  %v955_v29 = vrot.slane %v4821_v5, 2  ;;  %v2827_v62 = vld [vmem:[%s5652_s1 + $0x128] sm:$0xff] }
  0x94   : > { %3282 = vmatmul.mubr.f32.gmra.mrb[10].mxu1 %v4892_v38  ;;  %3919 = vmatprep.subr.bf16.mxu0 %v3918_v18 }
  0x95   : > { %3506 = vmatmul.mubr.f32.gmra.mrb[10].mxu0 %v4998_v36  ;;  %3793 = vmatpush3.bf16.msra.mxu1 %v3790_v15  ;;  %v945_v15 = vrot.slane %v4729_v26, 2 }
  0x96   : > { %3921 = vmatpush3.bf16.msra.mxu0 %v3918_v18  ;;  %3284 = vmatprep.mubr.f32.mxu1 %v4923_v51  ;;  %v946_v18 = vrot.slane %v4732_v27, 2 }
  0x97   : > { %3508 = vmatprep.mubr.f32.mxu0 %v5007_v45  ;;  %3795 = vmatprep.subr.bf16.mxu1 %v3794_v41 }
  0x98   : > { %3285 = vmatmul.mubr.f32.gmra.mrb[12].mxu1 %v4926_v52  ;;  %3923 = vmatprep.subr.bf16.mxu0 %v3922_v46  ;;  %v5064_v49 = vsel %vm939_vm1, %v945_v15, %v946_v18  ;;  %v5083_v15 = vsel %vm939_vm1, %v946_v18, %v948_v32  ;;  %v2826_v18 = vld [vmem:[%s5652_s1 + $0x120] sm:$0xff] }
  0x99   : > { %3509 = vmatmul.mubr.f32.gmra.mrb[12].mxu0 %v5026_v63  ;;  %3797 = vmatpush3.bf16.msra.mxu1 %v3794_v41  ;;  %v675_v41 = vsel %vm672_vm0, %v673_v2, %v674_v3  ;;  %v2889_v2 = vld [vmem:[%s5652_s1 + $0x318] sm:$0xff] }
  0x9a   : > { %3925 = vmatpush3.bf16.msra.mxu0 %v3922_v46  ;;  %3287 = vmatprep.mubr.f32.mxu1 %v4957_v9  ;;  %v951_v46 = vrot.slane %v4797_v57, 2  ;;  %v3934_v23 = vpack.c.bf16 %v2889_v2, %v2888_v0  ;;  %v963_v0 = vrot.slane %v4867_v25, 2  ;;  %v2831_v25 = vld [vmem:[%s5652_s1 + $0x148] sm:$0xff] }
  0x9b   : > { %3511 = vmatprep.mubr.f32.mxu0 %v5037_v8  ;;  %3799 = vmatprep.subr.bf16.mxu1 %v3798_v4 }
  0x9c   : > { %3288 = vmatmul.mubr.f32.gmra.mrb[14].mxu1 %v4960_v12  ;;  %3927 = vmatprep.subr.bf16.mxu0 %v3926_v14  ;;  %v5088_v3 = vsel %vm939_vm1, %v950_v53, %v951_v46  ;;  %v5107_v32 = vsel %vm939_vm1, %v951_v46, %v953_v22  ;;  %v2828_v46 = vld [vmem:[%s5652_s1 + $0x130] sm:$0xff] }
  0x9d   : > { %3512 = vmatmul.mubr.f32.gmra.mrb[14].mxu0 %v5058_v40  ;;  %3801 = vmatpush3.bf16.msra.mxu1 %v3798_v4  ;;  %v3806_v4 = vpack.c.bf16 %v2825_v55, %v2824_v48  ;;  %v3938_v48 = vpack.c.bf16 %v2891_v31, %v2890_v30  ;;  %v2893_v55 = vld [vmem:[%s5652_s1 + $0x338] sm:$0xff]  ;;  %v968_v31 = vrot.slane %v4901_v42, 2 }
  0x9e   : > { %3929 = vmatpush3.bf16.msra.mxu0 %v3926_v14  ;;  %3322 = vmatprep.mubr.f32.mxu1 %v675_v41  ;;  %v956_v14 = vrot.slane %v4824_v6, 2  ;;  %v958_v41 = vrot.slane %v4833_v10, 2  ;;  %v2829_v10 = vld [vmem:[%s5652_s1 + $0x138] sm:$0xff] }
  0x9f   : > { %3546 = vmatprep.mubr.f32.mxu0 %v5064_v49  ;;  %3803 = vmatprep.subr.bf16.mxu1 %v3802_v47  ;;  %v3814_v2 = vpack.c.bf16 %v2829_v10, %v2828_v46  ;;  %v971_v46 = vrot.slane %v4926_v52, 2  ;;  %v2833_v42 = vld [vmem:[%s5652_s1 + $0x158] sm:$0xff]  ;;  %v2896_v10 = vld [vmem:[%s5652_s1 + $0x350] sm:$0xff] }
  0xa0   : > { %3323 = vmatmul.mubr.f32.vlgmr.msra.gmra.mrb[0].mxu1 %v677_v58  ;;  %3931 = vmatprep.subr.bf16.mxu0 %v3930_v50  ;;  %v5113_v53 = vsel %vm939_vm1, %v955_v29, %v956_v14  ;;  %v5132_v58 = vsel %vm939_vm1, %v956_v14, %v958_v41  ;;  %v966_v29 = vrot.slane %v4892_v38, 2  ;;  %v2830_v14 = vld [vmem:[%s5652_s1 + $0x140] sm:$0xff] }
  0xa1   : > { %3547 = vmatmul.mubr.f32.vlgmr.msra.gmra.mrb[0].mxu0 %v5083_v15  ;;  %3805 = vmatpush3.bf16.msra.mxu1 %v3802_v47  ;;  %v3810_v47 = vpack.c.bf16 %v2827_v62, %v2826_v18  ;;  %v2894_v18 = vld [vmem:[%s5652_s1 + $0x340] sm:$0xff]  ;;  %v2895_v62 = vld [vmem:[%s5652_s1 + $0x348] sm:$0xff]  ;;  %v3818_v41 = vpack.c.bf16 %v2831_v25, %v2830_v14  ;;  %v976_v25 = vrot.slane %v4960_v12, 2 }
  0xa2   : > { %3933 = vmatpush3.bf16.msra.mxu0 %v3930_v50  ;;  %3325 = vmatprep.mubr.f32.mxu1 %v4745_v34  ;;  %v960_v50 = vrot.slane %v4855_v19, 2  ;;  %v961_v34 = vrot.slane %v4858_v20, 2 }
  0xa3   : > { %3549 = vmatprep.mubr.f32.mxu0 %v5088_v3  ;;  %3807 = vmatprep.subr.bf16.mxu1 %v3806_v4 }
  0xa4   : > { %3326 = vmatmul.mubr.f32.gmra.mrb[2].mxu1 %v4829_v7  ;;  %3935 = vmatprep.subr.bf16.mxu0 %v3934_v23  ;;  %v2892_v7 = vld [vmem:[%s5652_s1 + $0x330] sm:$0xff]  ;;  %v5138_v22 = vsel %vm939_vm1, %v960_v50, %v961_v34  ;;  %v5157_v30 = vsel %vm939_vm1, %v961_v34, %v963_v0  ;;  %v3946_v50 = vpack.c.bf16 %v2895_v62, %v2894_v18  ;;  %v973_v0 = vrot.slane %v4935_v59, 2  ;;  %v2835_v59 = vld [vmem:[%s5652_s1 + $0x168] sm:$0xff]  ;;  %v2898_v18 = vld [vmem:[%s5652_s1 + $0x360] sm:$0xff] }
  0xa5   : > { %3550 = vmatmul.mubr.f32.gmra.mrb[2].mxu0 %v5107_v32  ;;  %3809 = vmatpush3.bf16.msra.mxu1 %v3806_v4  ;;  %v3942_v4 = vpack.c.bf16 %v2893_v55, %v2892_v7  ;;  %v2832_v34 = vld [vmem:[%s5652_s1 + $0x150] sm:$0xff]  ;;  %v2897_v7 = vld [vmem:[%s5652_s1 + $0x358] sm:$0xff]  ;;  %v5182_v55 = vsel %vm939_vm1, %v966_v29, %v968_v31  ;;  %v2899_v62 = vld [vmem:[%s5652_s1 + $0x368] sm:$0xff] }
  0xa6   : > { %3937 = vmatpush3.bf16.msra.mxu0 %v3934_v23  ;;  %3328 = vmatprep.mubr.f32.mxu1 %v4837_v11  ;;  %v965_v23 = vrot.slane %v4889_v37, 2  ;;  %v3950_v14 = vpack.c.bf16 %v2897_v7, %v2896_v10  ;;  %v5207_v31 = vsel %vm939_vm1, %v971_v46, %v973_v0  ;;  %v1637_v10 = vrot.slane %v4994_v35, 2  ;;  %v2900_v7 = vld [vmem:[%s5652_s1 + $0x370] sm:$0xff]  ;;  %v2901_v0 = vld [vmem:[%s5652_s1 + $0x378] sm:$0xff] }
  0xa7   : > { %3552 = vmatprep.mubr.f32.mxu0 %v5113_v53  ;;  %3811 = vmatprep.subr.bf16.mxu1 %v3810_v47 }
  0xa8   : > { %3329 = vmatmul.mubr.f32.gmra.mrb[4].mxu1 %v4862_v21  ;;  %3939 = vmatprep.subr.bf16.mxu0 %v3938_v48 }
  0xa9   : > { %3553 = vmatmul.mubr.f32.gmra.mrb[4].mxu0 %v5132_v58  ;;  %3813 = vmatpush3.bf16.msra.mxu1 %v3810_v47  ;;  %v5163_v47 = vsel %vm939_vm1, %v965_v23, %v966_v29  ;;  %v2834_v29 = vld [vmem:[%s5652_s1 + $0x160] sm:$0xff] }
  0xaa   : > { %3941 = vmatpush3.bf16.msra.mxu0 %v3938_v48  ;;  %3331 = vmatprep.mubr.f32.mxu1 %v4871_v28  ;;  %v970_v48 = vrot.slane %v4923_v51, 2 }
  0xab   : > { %3555 = vmatprep.mubr.f32.mxu0 %v5138_v22  ;;  %3815 = vmatprep.subr.bf16.mxu1 %v3814_v2 }
  0xac   : > { %3332 = vmatmul.mubr.f32.gmra.mrb[6].mxu1 %v4896_v39  ;;  %3943 = vmatprep.subr.bf16.mxu0 %v3942_v4  ;;  %v5188_v23 = vsel %vm939_vm1, %v970_v48, %v971_v46  ;;  %v978_v48 = vrot.slane %v4969_v16, 2  ;;  %v2836_v46 = vld [vmem:[%s5652_s1 + $0x170] sm:$0xff]  ;;  %v2837_v16 = vld [vmem:[%s5652_s1 + $0x178] sm:$0xff] }
  0xad   : > { %3556 = vmatmul.mubr.f32.gmra.mrb[6].mxu0 %v5157_v30  ;;  %3817 = vmatpush3.bf16.msra.mxu1 %v3814_v2  ;;  %v3822_v2 = vpack.c.bf16 %v2833_v42, %v2832_v34  ;;  %v3954_v42 = vpack.c.bf16 %v2899_v62, %v2898_v18  ;;  %v3830_v18 = vpack.c.bf16 %v2837_v16, %v2836_v46  ;;  %v2840_v16 = vld [vmem:[%s5652_s1 + $0x190] sm:$0xff] }
  0xae   : > { %3945 = vmatpush3.bf16.msra.mxu0 %v3942_v4  ;;  %3334 = vmatprep.mubr.f32.mxu1 %v4905_v43  ;;  %v975_v4 = vrot.slane %v4957_v9, 2  ;;  %v3958_v62 = vpack.c.bf16 %v2901_v0, %v2900_v7  ;;  %v2904_v7 = vld [vmem:[%s5652_s1 + $0x390] sm:$0xff]  ;;  %v2905_v0 = vld [vmem:[%s5652_s1 + $0x398] sm:$0xff] }
  0xaf   : > { %3558 = vmatprep.mubr.f32.mxu0 %v5163_v47  ;;  %3819 = vmatprep.subr.bf16.mxu1 %v3818_v41 }
  0xb0   : > { %3335 = vmatmul.mubr.f32.gmra.mrb[8].mxu1 %v4930_v54  ;;  %3947 = vmatprep.subr.bf16.mxu0 %v3946_v50  ;;  %v5213_v34 = vsel %vm939_vm1, %v975_v4, %v976_v25  ;;  %v5232_v4 = vsel %vm939_vm1, %v976_v25, %v978_v48  ;;  %v2838_v25 = vld [vmem:[%s5652_s1 + $0x180] sm:$0xff]  ;;  %v2903_v48 = vld [vmem:[%s5652_s1 + $0x388] sm:$0xff] }
  0xb1   : > { %3559 = vmatmul.mubr.f32.gmra.mrb[8].mxu0 %v5182_v55  ;;  %3821 = vmatpush3.bf16.msra.mxu1 %v3818_v41  ;;  %v3826_v41 = vpack.c.bf16 %v2835_v59, %v2834_v29  ;;  %v1639_v29 = vrot.slane %v5003_v44, 2  ;;  %v940_v59 = vrot.slane %v4722_v24, 2  ;;  %v2839_v24 = vld [vmem:[%s5652_s1 + $0x188] sm:$0xff]  ;;  %v2902_v44 = vld [vmem:[%s5652_s1 + $0x380] sm:$0xff] }
  0xb2   : > { %3949 = vmatpush3.bf16.msra.mxu0 %v3946_v50  ;;  %3337 = vmatprep.mubr.f32.mxu1 %v4939_v61  ;;  %v1636_v50 = vrot.slane %v4991_v33, 2  ;;  %v3962_v46 = vpack.c.bf16 %v2903_v48, %v2902_v44  ;;  %v2844_v44 = vld [vmem:[%s5652_s1 + $0x1b0] sm:$0xff]  ;;  %v2845_v48 = vld [vmem:[%s5652_s1 + $0x1b8] sm:$0xff] }
  0xb3   : > { %3561 = vmatprep.mubr.f32.mxu0 %v5188_v23  ;;  %3823 = vmatprep.subr.bf16.mxu1 %v3822_v2 }
  0xb4   : > { %3338 = vmatmul.mubr.f32.gmra.mrb[10].mxu1 %v4964_v13  ;;  %3951 = vmatprep.subr.bf16.mxu0 %v3950_v14 }
  0xb5   : > { %3562 = vmatmul.mubr.f32.gmra.mrb[10].mxu0 %v5207_v31  ;;  %3825 = vmatpush3.bf16.msra.mxu1 %v3822_v2  ;;  %v941_v2 = vrot.slane %v4801_v60, 2  ;;  %v943_v60 = vrot.slane %v5030_v1, 2  ;;  %v3834_v1 = vpack.c.bf16 %v2839_v24, %v2838_v25  ;;  %v2907_v25 = vld [vmem:[%s5652_s1 + $0x3a8] sm:$0xff] }
  0xb6   : > { %3953 = vmatpush3.bf16.msra.mxu0 %v3950_v14  ;;  %3340 = vmatprep.mubr.f32.mxu1 %v4973_v17  ;;  %v5240_v14 = vsel %vm939_vm1, %v1636_v50, %v1637_v10  ;;  %v5258_v50 = vsel %vm939_vm1, %v1637_v10, %v1639_v29 }
  0xb7   : > { %3564 = vmatprep.mubr.f32.mxu0 %v5213_v34  ;;  %3827 = vmatprep.subr.bf16.mxu1 %v3826_v41  ;;  %v944_v10 = vsel %vm939_vm1, %v941_v2, %v943_v60 }
  0xb8   : > { %3341 = vmatmul.mubr.f32.gmra.mrb[12].mxu1 %v4998_v36  ;;  %3955 = vmatprep.subr.bf16.mxu0 %v3954_v42 }
  0xb9   : > { %3565 = vmatmul.mubr.f32.gmra.mrb[12].mxu0 %v5232_v4  ;;  %3829 = vmatpush3.bf16.msra.mxu1 %v3826_v41  ;;  %v942_v41 = vsel %vm939_vm1, %v940_v59, %v941_v2  ;;  %v3966_v59 = vpack.c.bf16 %v2905_v0, %v2904_v7  ;;  %v2842_v2 = vld [vmem:[%s5652_s1 + $0x1a0] sm:$0xff] }
  0xba   : > { %3957 = vmatpush3.bf16.msra.mxu0 %v3954_v42  ;;  %3343 = vmatprep.mubr.f32.mxu1 %v5007_v45  ;;  %v2841_v42 = vld [vmem:[%s5652_s1 + $0x198] sm:$0xff] }
  0xbb   : > { %3567 = vmatprep.mubr.f32.mxu0 %v5240_v14  ;;  %3831 = vmatprep.subr.bf16.mxu1 %v3830_v18  ;;  %v3838_v29 = vpack.c.bf16 %v2841_v42, %v2840_v16  ;;  %v2847_v16 = vld [vmem:[%s5652_s1 + $0x1c8] sm:$0xff]  ;;  %v2910_v42 = vld [vmem:[%s5652_s1 + $0x3c0] sm:$0xff] }
  0xbc   : > { %3344 = vmatmul.mubr.f32.gmra.mrb[14].mxu1 %v5026_v63  ;;  %3959 = vmatprep.subr.bf16.mxu0 %v3958_v62 }
  0xbd   : > { %3568 = vmatmul.mubr.f32.gmra.mrb[14].mxu0 %v5258_v50  ;;  %3833 = vmatpush3.bf16.msra.mxu1 %v3830_v18  ;;  %v2843_v18 = vld [vmem:[%s5652_s1 + $0x1a8] sm:$0xff] }
  0xbe   : > { %3961 = vmatpush3.bf16.msra.mxu0 %v3958_v62  ;;  %3378 = vmatprep.mubr.f32.mxu1 %v942_v41  ;;  %v2906_v62 = vld [vmem:[%s5652_s1 + $0x3a0] sm:$0xff]  ;;  %v3842_v24 = vpack.c.bf16 %v2843_v18, %v2842_v2  ;;  %v3846_v41 = vpack.c.bf16 %v2845_v48, %v2844_v44  ;;  %v2912_v2 = vld [vmem:[%s5652_s1 + $0x3d0] sm:$0xff]  ;;  %v2913_v18 = vld [vmem:[%s5652_s1 + $0x3d8] sm:$0xff] }
  0xbf   : > { %3602 = vmatprep.mubr.f32.mxu0 %v4794_v56  ;;  %3835 = vmatprep.subr.bf16.mxu1 %v3834_v1  ;;  %v3970_v60 = vpack.c.bf16 %v2907_v25, %v2906_v62  ;;  %v3982_v25 = vpack.c.bf16 %v2913_v18, %v2912_v2  ;;  %v2914_v44 = vld [vmem:[%s5652_s1 + $0x3e0] sm:$0xff]  ;;  %v2915_v48 = vld [vmem:[%s5652_s1 + $0x3e8] sm:$0xff]  ;;  %v2920_v18 = vld [vmem:[%s5652_s1 + $0x410] sm:$0xff] }
  0xc0   : > { %3379 = vmatmul.mubr.f32.vlgmr.msra.gmra.mrb[0].mxu1 %v944_v10  ;;  %3963 = vmatprep.subr.bf16.mxu0 %v3962_v46  ;;  %v2911_v10 = vld [vmem:[%s5652_s1 + $0x3c8] sm:$0xff] }
  0xc1   : > { %3603 = vmatmul.mubr.f32.vlgmr.msra.gmra.mrb[0].mxu0 %v4797_v57  ;;  %3837 = vmatpush3.bf16.msra.mxu1 %v3834_v1  ;;  %v3978_v0 = vpack.c.bf16 %v2911_v10, %v2910_v42  ;;  %v5375_v10 = vld [vmem:[%s4578_s28 + $0xd8] sm:$0xff] }
  0xc2   : > { %3965 = vmatpush3.bf16.msra.mxu0 %v3962_v46  ;;  %3381 = vmatprep.mubr.f32.mxu1 %v5064_v49  ;;  %v2908_v49 = vld [vmem:[%s5652_s1 + $0x3b0] sm:$0xff]  ;;  %v2846_v46 = vld [vmem:[%s5652_s1 + $0x1c0] sm:$0xff] }
  0xc3   : > { %3605 = vmatprep.mubr.f32.mxu0 %v4821_v5  ;;  %3839 = vmatprep.subr.bf16.mxu1 %v3838_v29  ;;  %v3850_v7 = vpack.c.bf16 %v2847_v16, %v2846_v46  ;;  %v2916_v46 = vld [vmem:[%s5652_s1 + $0x3f0] sm:$0xff]  ;;  %v2917_v16 = vld [vmem:[%s5652_s1 + $0x3f8] sm:$0xff] }
  0xc4   : > { %3382 = vmatmul.mubr.f32.gmra.mrb[2].mxu1 %v5083_v15  ;;  %3967 = vmatprep.subr.bf16.mxu0 %v3966_v59  ;;  %v2909_v15 = vld [vmem:[%s5652_s1 + $0x3b8] sm:$0xff] }
  0xc5   : > { %3606 = vmatmul.mubr.f32.gmra.mrb[2].mxu0 %v4824_v6  ;;  %3841 = vmatpush3.bf16.msra.mxu1 %v3838_v29  ;;  %v3974_v1 = vpack.c.bf16 %v2909_v15, %v2908_v49  ;;  %v2848_v29 = vld [vmem:[%s5652_s1 + $0x1d0] sm:$0xff]  ;;  %v3986_v15 = vpack.c.bf16 %v2915_v48, %v2914_v44 }
  0xc6   : > { %3969 = vmatpush3.bf16.msra.mxu0 %v3966_v59  ;;  %3384 = vmatprep.mubr.f32.mxu1 %v5088_v3  ;;  %v2849_v59 = vld [vmem:[%s5652_s1 + $0x1d8] sm:$0xff] }
  0xc7   : > { %3608 = vmatprep.mubr.f32.mxu0 %v4855_v19  ;;  %3843 = vmatprep.subr.bf16.mxu1 %v3842_v24  ;;  %v3854_v62 = vpack.c.bf16 %v2849_v59, %v2848_v29  ;;  %v2919_v29 = vld [vmem:[%s5652_s1 + $0x408] sm:$0xff]  ;;  %v5386_v59 = vld [vmem:[%s4578_s28 + $0xe0] sm:$0xff] }
  0xc8   : > { %3385 = vmatmul.mubr.f32.gmra.mrb[4].mxu1 %v5107_v32  ;;  %3971 = vmatprep.subr.bf16.mxu0 %v3970_v60 }
  0xc9   : > { %3609 = vmatmul.mubr.f32.gmra.mrb[4].mxu0 %v4858_v20  ;;  %3845 = vmatpush3.bf16.msra.mxu1 %v3842_v24  ;;  %v2850_v24 = vld [vmem:[%s5652_s1 + $0x1e0] sm:$0xff] }
  0xca   : > { %3973 = vmatpush3.bf16.msra.mxu0 %v3970_v60  ;;  %3387 = vmatprep.mubr.f32.mxu1 %v5113_v53  ;;  %v2851_v60 = vld [vmem:[%s5652_s1 + $0x1e8] sm:$0xff] }
  0xcb   : > { %3611 = vmatprep.mubr.f32.mxu0 %v4889_v37  ;;  %3847 = vmatprep.subr.bf16.mxu1 %v3846_v41  ;;  %v3858_v49 = vpack.c.bf16 %v2851_v60, %v2850_v24  ;;  %v2922_v24 = vld [vmem:[%s5652_s1 + $0x420] sm:$0xff]  ;;  %v2923_v60 = vld [vmem:[%s5652_s1 + $0x428] sm:$0xff] }
  0xcc   : > { %3388 = vmatmul.mubr.f32.gmra.mrb[6].mxu1 %v5132_v58  ;;  %3975 = vmatprep.subr.bf16.mxu0 %v3974_v1 }
  0xcd   : > { %3612 = vmatmul.mubr.f32.gmra.mrb[6].mxu0 %v4892_v38  ;;  %3849 = vmatpush3.bf16.msra.mxu1 %v3846_v41  ;;  %v2852_v41 = vld [vmem:[%s5652_s1 + $0x1f0] sm:$0xff] }
  0xce   : > { %3977 = vmatpush3.bf16.msra.mxu0 %v3974_v1  ;;  %3390 = vmatprep.mubr.f32.mxu1 %v5138_v22  ;;  %v2853_v1 = vld [vmem:[%s5652_s1 + $0x1f8] sm:$0xff] }
  0xcf   : > { %3614 = vmatprep.mubr.f32.mxu0 %v4923_v51  ;;  %3851 = vmatprep.subr.bf16.mxu1 %v3850_v7  ;;  %v3862_v42 = vpack.c.bf16 %v2853_v1, %v2852_v41 }
  0xd0   : > { %3391 = vmatmul.mubr.f32.gmra.mrb[8].mxu1 %v5157_v30  ;;  %3979 = vmatprep.subr.bf16.mxu0 %v3978_v0 }
  0xd1   : > { %3615 = vmatmul.mubr.f32.gmra.mrb[8].mxu0 %v4926_v52  ;;  %3853 = vmatpush3.bf16.msra.mxu1 %v3850_v7  ;;  %v3990_v7 = vpack.c.bf16 %v2917_v16, %v2916_v46 }
  0xd2   : > { %3981 = vmatpush3.bf16.msra.mxu0 %v3978_v0  ;;  %3393 = vmatprep.mubr.f32.mxu1 %v5163_v47  ;;  %v2918_v0 = vld [vmem:[%s5652_s1 + $0x400] sm:$0xff] }
  0xd3   : > { %3617 = vmatprep.mubr.f32.mxu0 %v4957_v9  ;;  %3855 = vmatprep.subr.bf16.mxu1 %v3854_v62  ;;  %v3994_v2 = vpack.c.bf16 %v2919_v29, %v2918_v0 }
  0xd4   : > { %3394 = vmatmul.mubr.f32.gmra.mrb[10].mxu1 %v5182_v55  ;;  %3983 = vmatprep.subr.bf16.mxu0 %v3982_v25 }
  0xd5   : > { %3618 = vmatmul.mubr.f32.gmra.mrb[10].mxu0 %v4960_v12  ;;  %3857 = vmatpush3.bf16.msra.mxu1 %v3854_v62  ;;  %v2921_v62 = vld [vmem:[%s5652_s1 + $0x418] sm:$0xff] }
  0xd6   : > { %3985 = vmatpush3.bf16.msra.mxu0 %v3982_v25  ;;  %3396 = vmatprep.mubr.f32.mxu1 %v5188_v23  ;;  %v3998_v25 = vpack.c.bf16 %v2921_v62, %v2920_v18 }
  0xd7   : > { %3620 = vmatprep.mubr.f32.mxu0 %v4991_v33  ;;  %3859 = vmatprep.subr.bf16.mxu1 %v3858_v49 }
  0xd8   : > { %3397 = vmatmul.mubr.f32.gmra.mrb[12].mxu1 %v5207_v31  ;;  %3987 = vmatprep.subr.bf16.mxu0 %v3986_v15 }
  0xd9   : > { %3621 = vmatmul.mubr.f32.gmra.mrb[12].mxu0 %v4994_v35  ;;  %3861 = vmatpush3.bf16.msra.mxu1 %v3858_v49 }
  0xda   : > { %3989 = vmatpush3.bf16.msra.mxu0 %v3986_v15  ;;  %3399 = vmatprep.mubr.f32.mxu1 %v5213_v34 }
  0xdb   : > { %3623 = vmatprep.mubr.f32.mxu0 %v5375_v10  ;;  %3863 = vmatprep.subr.bf16.mxu1 %v3862_v42 }
  0xdc   : > { %3400 = vmatmul.mubr.f32.gmra.mrb[14].mxu1 %v5232_v4  ;;  %3991 = vmatprep.subr.bf16.mxu0 %v3990_v7 }
  0xdd   : > { %3624 = vmatmul.mubr.f32.gmra.mrb[14].mxu0 %v5386_v59  ;;  %3865 = vmatpush3.bf16.msra.mxu1 %v3862_v42 }
  0xde   : > { %3993 = vmatpush3.bf16.msra.mxu0 %v3990_v7  ;;  %3434 = vmatprep.mubr.f32.mxu1 %v4729_v26  ;;  %v4002_v26 = vpack.c.bf16 %v2923_v60, %v2922_v24 }
  0xdf   : > { %3658 = vmatprep.mubr.f32.mxu0 %v4837_v11  ;;  %3995 = vmatprep.subr.bf16.mxu0 %v3994_v2  ;;  %v2925_v11 = vld [vmem:[%s5652_s1 + $0x438] sm:$0xff] }
  0xe0   : > { %3435 = vmatmul.mubr.f32.vlgmr.msra.gmra.mrb[0].mxu1 %v4732_v27  ;;  %4026 = vmatprep.subr.bf16.mxu1 %v3994_v2  ;;  %v2924_v27 = vld [vmem:[%s5652_s1 + $0x430] sm:$0xff] }
  0xe1   : > { %3659 = vmatmul.mubr.f32.vlgmr.msra.gmra.mrb[0].mxu0 %v4862_v21  ;;  %4034 = vmatpush3.bf16.msra.mxu1 %v3994_v2  ;;  %v2927_v21 = vld [vmem:[%s5652_s1 + $0x448] sm:$0xff] }
  0xe2   : > { %3997 = vmatpush3.bf16.msra.mxu0 %v3994_v2  ;;  %3437 = vmatprep.mubr.f32.mxu1 %v4794_v56  ;;  %v4006_v56 = vpack.c.bf16 %v2925_v11, %v2924_v27 }
  0xe3   : > { %3661 = vmatprep.mubr.f32.mxu0 %v4871_v28  ;;  %3999 = vmatprep.subr.bf16.mxu0 %v3998_v25  ;;  %v2929_v28 = vld [vmem:[%s5652_s1 + $0x458] sm:$0xff] }
  0xe4   : > { %3438 = vmatmul.mubr.f32.gmra.mrb[2].mxu1 %v4797_v57  ;;  %4027 = vmatprep.subr.bf16.mxu1 %v3998_v25  ;;  %v2926_v57 = vld [vmem:[%s5652_s1 + $0x440] sm:$0xff] }
  0xe5   : > { %3662 = vmatmul.mubr.f32.gmra.mrb[2].mxu0 %v4896_v39  ;;  %4035 = vmatpush3.bf16.msra.mxu1 %v3998_v25  ;;  %v2931_v39 = vld [vmem:[%s5652_s1 + $0x468] sm:$0xff] }
  0xe6   : > { %4001 = vmatpush3.bf16.msra.mxu0 %v3998_v25  ;;  %3440 = vmatprep.mubr.f32.mxu1 %v4821_v5  ;;  %v4010_v5 = vpack.c.bf16 %v2927_v21, %v2926_v57 }
  0xe7   : > { %3664 = vmatprep.mubr.f32.mxu0 %v4905_v43  ;;  %4003 = vmatprep.subr.bf16.mxu0 %v4002_v26  ;;  %v2066_v43 = vrot.slane %v5375_v10, 1 }
  0xe8   : > { %3441 = vmatmul.mubr.f32.gmra.mrb[4].mxu1 %v4824_v6  ;;  %4028 = vmatprep.subr.bf16.mxu1 %v4002_v26  ;;  %v2928_v6 = vld [vmem:[%s5652_s1 + $0x450] sm:$0xff] }
  0xe9   : > { %3665 = vmatmul.mubr.f32.gmra.mrb[4].mxu0 %v4930_v54  ;;  %4036 = vmatpush3.bf16.msra.mxu1 %v4002_v26  ;;  %v2067_v54 = vrot.slane %v5386_v59, 1 }
  0xea   : > { %4005 = vmatpush3.bf16.msra.mxu0 %v4002_v26  ;;  %3443 = vmatprep.mubr.f32.mxu1 %v4855_v19  ;;  %v4014_v19 = vpack.c.bf16 %v2929_v28, %v2928_v6 }
  0xeb   : > { %3667 = vmatprep.mubr.f32.mxu0 %v4939_v61  ;;  %4007 = vmatprep.subr.bf16.mxu0 %v4006_v56  ;;  %v2932_v61 = vld [vmem:[%s5652_s1 + $0x470] sm:$0xff] }
  0xec   : > { %3444 = vmatmul.mubr.f32.gmra.mrb[6].mxu1 %v4858_v20  ;;  %4029 = vmatprep.subr.bf16.mxu1 %v4006_v56  ;;  %v2930_v20 = vld [vmem:[%s5652_s1 + $0x460] sm:$0xff] }
  0xed   : > { %3668 = vmatmul.mubr.f32.gmra.mrb[6].mxu0 %v4964_v13  ;;  %4037 = vmatpush3.bf16.msra.mxu1 %v4006_v56 }
  0xee   : > { %4009 = vmatpush3.bf16.msra.mxu0 %v4006_v56  ;;  %3446 = vmatprep.mubr.f32.mxu1 %v4889_v37  ;;  %v4018_v37 = vpack.c.bf16 %v2931_v39, %v2930_v20 }
  0xef   : > { %3670 = vmatprep.mubr.f32.mxu0 %v4973_v17  ;;  %4011 = vmatprep.subr.bf16.mxu0 %v4010_v5  ;;  %v2068_v17 = vsel %vm672_vm0, %v2066_v43, %v2067_v54 }
  0xf0   : > { %3447 = vmatmul.mubr.f32.gmra.mrb[8].mxu1 %v4892_v38  ;;  %4030 = vmatprep.subr.bf16.mxu1 %v4010_v5  ;;  %v470_v38 = vld [vmem:[%s4578_s28 + $0xe8] sm:$0x3]  ;;  %s2945_s28 = sshll.u32 %s4361_s15, 4 }
  0xf1   : > { %3671 = vmatmul.mubr.f32.gmra.mrb[8].mxu0 %v4998_v36  ;;  %4038 = vmatpush3.bf16.msra.mxu1 %v4010_v5  ;;  %v2069_v13 = vrot.slane %v470_v38, 1  ;;  %s5518_s15 = sadd.s32 %s2945_s28, %s2937_s6 }
  0xf2   : > { %4013 = vmatpush3.bf16.msra.mxu0 %v4010_v5  ;;  %3449 = vmatprep.mubr.f32.mxu1 %v4923_v51  ;;  %v2933_v51 = vld [vmem:[%s5652_s1 + $0x478] sm:$0xff]  ;;  %s2938_s7 = sshll.u32 %s5518_s15, 7 }
  0xf3   : > { %3673 = vmatprep.mubr.f32.mxu0 %v5007_v45  ;;  %4015 = vmatprep.subr.bf16.mxu0 %v4014_v19  ;;  %v2070_v36 = vsel %vm672_vm0, %v2067_v54, %v2069_v13  ;;  %s5545_s23 = scalar_lea.hbm %s5653_s2, %s2938_s7 }
  0xf4   : > { %3450 = vmatmul.mubr.f32.gmra.mrb[10].mxu1 %v4926_v52  ;;  %4031 = vmatprep.subr.bf16.mxu1 %v4014_v19  ;;  %v4022_v52 = vpack.c.bf16 %v2933_v51, %v2932_v61 }
  0xf5   : > { %3674 = vmatmul.mubr.f32.gmra.mrb[10].mxu0 %v5026_v63  ;;  %4039 = vmatpush3.bf16.msra.mxu1 %v4014_v19 }
  0xf6   : > { %4017 = vmatpush3.bf16.msra.mxu0 %v4014_v19  ;;  %3452 = vmatprep.mubr.f32.mxu1 %v4957_v9  ;;  %v2283_v9 = vrot.slane %v5375_v10, 2 }
  0xf7   : > { %3676 = vmatprep.mubr.f32.mxu0 %v5037_v8  ;;  %4019 = vmatprep.subr.bf16.mxu0 %v4018_v37 }
  0xf8   : > { %3453 = vmatmul.mubr.f32.gmra.mrb[12].mxu1 %v4960_v12  ;;  %4032 = vmatprep.subr.bf16.mxu1 %v4018_v37  ;;  %v2284_v12 = vrot.slane %v5386_v59, 2 }
  0xf9   : > { %3677 = vmatmul.mubr.f32.gmra.mrb[12].mxu0 %v5058_v40  ;;  %4040 = vmatpush3.bf16.msra.mxu1 %v4018_v37 }
  0xfa   : > { %4021 = vmatpush3.bf16.msra.mxu0 %v4018_v37  ;;  %3455 = vmatprep.mubr.f32.mxu1 %v4991_v33  ;;  %v2286_v33 = vrot.slane %v470_v38, 2 }
  0xfb   : > { %3679 = vmatprep.mubr.f32.mxu0 %v2068_v17  ;;  %4023 = vmatprep.subr.bf16.mxu0 %v4022_v52 }
  0xfc   : > { %3456 = vmatmul.mubr.f32.gmra.mrb[14].mxu1 %v4994_v35  ;;  %4033 = vmatprep.subr.bf16.mxu1 %v4022_v52  ;;  %v2285_v35 = vsel %vm939_vm1, %v2283_v9, %v2284_v12  ;;  %v2287_v45 = vsel %vm939_vm1, %v2284_v12, %v2286_v33 }
  0xfd   : > { %3680 = vmatmul.mubr.f32.gmra.mrb[14].mxu0 %v2070_v36  ;;  %4041 = vmatpush3.bf16.msra.mxu1 %v4022_v52 }
  0xfe   : > { %4025 = vmatpush3.bf16.msra.mxu0 %v4022_v52  ;;  %3714 = vmatprep.mubr.f32.mxu0 %v5088_v3 }
  0xff   : > { %3726 = vmatprep.mubr.f32.mxu1 %v5188_v23 }
 0x100   : > { %3727 = vmatmul.mubr.f32.vlgmr.msra.gmra.mrb[16].mxu1 %v5207_v31 }
 0x101   : > { %3715 = vmatmul.mubr.f32.vlgmr.msra.gmra.mrb[0].mxu0 %v5107_v32  ;;  %3729 = vmatprep.mubr.f32.mxu1 %v5213_v34 }
 0x102   : > { %3717 = vmatprep.mubr.f32.mxu0 %v5113_v53 }
 0x104   : > { %3730 = vmatmul.mubr.f32.gmra.mrb[18].mxu1 %v5232_v4 }
 0x105   : > { %3718 = vmatmul.mubr.f32.gmra.mrb[2].mxu0 %v5132_v58  ;;  %3732 = vmatprep.mubr.f32.mxu1 %v5240_v14 }
 0x106   : > { %3720 = vmatprep.mubr.f32.mxu0 %v5138_v22 }
 0x108   : > { %3733 = vmatmul.mubr.f32.gmra.mrb[20].mxu1 %v5258_v50 }
 0x109   : > { %3721 = vmatmul.mubr.f32.gmra.mrb[4].mxu0 %v5157_v30  ;;  %3735 = vmatprep.mubr.f32.mxu1 %v2285_v35 }
 0x10a   : > { %3723 = vmatprep.mubr.f32.mxu0 %v5163_v47 }
 0x10c   : > { %3736 = vmatmul.mubr.f32.gmra.mrb[22].mxu1 %v2287_v45 }
 0x10d   : > { %3724 = vmatmul.mubr.f32.gmra.mrb[6].mxu0 %v5182_v55 }
 0x1b3   : > { %v3436_v63 = vpop.f32.mrb[0].mxu1 }
 0x1b4   : > { %v1289_v8 = vpop.f32.mrb[1].mxu1 }
 0x1b7   : > { %v3439_v40 = vpop.f32.mrb[2].mxu1 }
 0x1b8   : > { %v1299_v3 = vpop.f32.mrb[3].mxu1 }
 0x1bb   : > { %v5486_v32 = vpop.f32.mrb[4].mxu1 }
 0x1bc   : > { %v5488_v53 = vpop.f32.mrb[5].mxu1 }
 0x1bf   : > { %v5490_v58 = vpop.f32.mrb[6].mxu1 }
 0x1c0   : > { %v5492_v22 = vpop.f32.mrb[7].mxu1 }
 0x1c3   : > { %v3448_v30 = vpop.f32.mrb[8].mxu1 }
 0x1c4   : > { %v3672_v23 = vpop.f32.mrb[8].mxu0  ;;  %v1329_v31 = vpop.f32.mrb[9].mxu1 }
 0x1c5   : > { %v4050_v34 = vadd.f32 %v3672_v23, %v3448_v30  ;;  %v2196_v47 = vpop.f32.mrb[9].mxu0 }
 0x1c6   : > { %v4052_v4 = vadd.f32 %v2196_v47, %v1329_v31 }
 0x1c7   : > { %v3451_v14 = vpop.f32.mrb[10].mxu1 }
 0x1c8   : > { %v3675_v55 = vpop.f32.mrb[10].mxu0  ;;  %v1339_v50 = vpop.f32.mrb[11].mxu1 }
 0x1c9   : > { %v4054_v44 = vadd.f32 %v3675_v55, %v3451_v14  ;;  %v2206_v48 = vpop.f32.mrb[11].mxu0 }
 0x1ca   : > { %v4056_v49 = vadd.f32 %v2206_v48, %v1339_v50 }
 0x1cb   : > { %v3454_v15 = vpop.f32.mrb[12].mxu1 }
 0x1cc   : > { %v3678_v41 = vpop.f32.mrb[12].mxu0  ;;  %v1349_v1 = vpop.f32.mrb[13].mxu1 }
 0x1cd   : > { %v4058_v46 = vadd.f32 %v3678_v41, %v3454_v15  ;;  %v2216_v16 = vpop.f32.mrb[13].mxu0 }
 0x1ce   : > { %v4060_v42 = vadd.f32 %v2216_v16, %v1349_v1 }
 0x1cf   : > { %v3457_v10 = vpop.f32.mrb[14].mxu1 }
 0x1d0   : > { %v3681_v7 = vpop.f32.mrb[14].mxu0  ;;  %v1359_v0 = vpop.f32.mrb[15].mxu1 }
 0x1d1   : > { %v4062_v29 = vadd.f32 %v3681_v7, %v3457_v10  ;;  %v2226_v59 = vpop.f32.mrb[15].mxu0 }
 0x1d2   : > { %v4064_v2 = vadd.f32 %v2226_v59, %v1359_v0 }
 0x1d3   : > { %v3728_v18 = vpop.f32.mrb[16].mxu1 }
 0x1d4   : > { %v3716_v62 = vpop.f32.mrb[0].mxu0  ;;  %v5494_v25 = vadd.f32 %v4050_v34, %v3728_v18  ;;  %v2413_v24 = vpop.f32.mrb[17].mxu1 }
 0x1d5   : > { %v4042_v60 = vadd.f32 %v3716_v62, %v3436_v63  ;;  %v2373_v26 = vpop.f32.mrb[1].mxu0  ;;  %v5496_v27 = vadd.f32 %v4052_v4, %v2413_v24 }
 0x1d6   : > { %2525 = vst [vmem:[%s4502_s20 + $0x48] sm:$0xff] %v5494_v25  ;;  %v4043_v11 = vadd.f32 %v2373_v26, %v1289_v8 }
 0x1d7   : > { %2517 = vst [vmem:[%s4502_s20 + $0x8] sm:$0xff] %v4042_v60  ;;  %v2554_v56 = vmul.f32 %v4042_v60, %v4042_v60  ;;  %2524 = vst [vmem:[%s4502_s20 + $0x40] sm:$0xff] %v5496_v27  ;;  %v3731_v57 = vpop.f32.mrb[18].mxu1 }
 0x1d8   : > { %2516 = vst [vmem:[%s4502_s20] sm:$0xff] %v4043_v11  ;;  %v2532_v21 = vadd.f32 %v4043_v11, %v4042_v60  ;;  %v2553_v5 = vmul.f32 %v4043_v11, %v4043_v11  ;;  %v3719_v6 = vpop.f32.mrb[2].mxu0  ;;  %v5504_v28 = vadd.f32 %v4054_v44, %v3731_v57  ;;  %v2423_v19 = vpop.f32.mrb[19].mxu1 }
 0x1d9   : > { %v4044_v20 = vadd.f32 %v3719_v6, %v3439_v40  ;;  %v2383_v39 = vpop.f32.mrb[3].mxu0  ;;  %v5506_v37 = vadd.f32 %v4056_v49, %v2423_v19 }
 0x1da   : > { %v2569_v38 = vadd.f32 %v2554_v56, %v2553_v5  ;;  %2527 = vst [vmem:[%s4502_s20 + $0x58] sm:$0xff] %v5504_v28  ;;  %v4045_v43 = vadd.f32 %v2383_v39, %v1299_v3 }
 0x1db   : > { %2519 = vst [vmem:[%s4502_s20 + $0x18] sm:$0xff] %v4044_v20  ;;  %2526 = vst [vmem:[%s4502_s20 + $0x50] sm:$0xff] %v5506_v37  ;;  %v3734_v54 = vpop.f32.mrb[20].mxu1  ;;  %v2556_v33 = vmul.f32 %v4044_v20, %v4044_v20 }
 0x1dc   : > { %2518 = vst [vmem:[%s4502_s20 + $0x10] sm:$0xff] %v4045_v43  ;;  %v2533_v61 = vadd.f32 %v4045_v43, %v2532_v21  ;;  %v2555_v51 = vmul.f32 %v4045_v43, %v4045_v43  ;;  %v3722_v13 = vpop.f32.mrb[4].mxu0  ;;  %v5516_v52 = vadd.f32 %v4058_v46, %v3734_v54  ;;  %v2433_v17 = vpop.f32.mrb[21].mxu1 }
 0x1dd   : > { %v4046_v36 = vadd.f32 %v3722_v13, %v5486_v32  ;;  %v2393_v9 = vpop.f32.mrb[5].mxu0  ;;  %v5521_v12 = vadd.f32 %v4060_v42, %v2433_v17 }
 0x1de   : > { %v2570_v35 = vadd.f32 %v2569_v38, %v2555_v51  ;;  %2529 = vst [vmem:[%s4502_s20 + $0x68] sm:$0xff] %v5516_v52  ;;  %v4047_v45 = vadd.f32 %v2393_v9, %v5488_v53  ;;  %v2534_v63 = vadd.f32 %v4044_v20, %v2533_v61 }
 0x1df   : > { %2521 = vst [vmem:[%s4502_s20 + $0x28] sm:$0xff] %v4046_v36  ;;  %2528 = vst [vmem:[%s4502_s20 + $0x60] sm:$0xff] %v5521_v12  ;;  %v3737_v8 = vpop.f32.mrb[22].mxu1  ;;  %v2558_v4 = vmul.f32 %v4046_v36, %v4046_v36 }
 0x1e0   : > { %2520 = vst [vmem:[%s4502_s20 + $0x20] sm:$0xff] %v4047_v45  ;;  %v2535_v40 = vadd.f32 %v4047_v45, %v2534_v63  ;;  %v2557_v3 = vmul.f32 %v4047_v45, %v4047_v45  ;;  %v2571_v32 = vadd.f32 %v2570_v35, %v2556_v33  ;;  %v3725_v30 = vpop.f32.mrb[6].mxu0  ;;  %v5532_v23 = vadd.f32 %v4062_v29, %v3737_v8  ;;  %v2443_v31 = vpop.f32.mrb[23].mxu1 }
 0x1e1   : > { %v4048_v53 = vadd.f32 %v3725_v30, %v5490_v58  ;;  %v2403_v34 = vpop.f32.mrb[7].mxu0  ;;  %v5535_v47 = vadd.f32 %v4064_v2, %v2443_v31 }
 0x1e2   : > { %v2572_v14 = vadd.f32 %v2571_v32, %v2557_v3  ;;  %2531 = vst [vmem:[%s4502_s20 + $0x78] sm:$0xff] %v5532_v23  ;;  %v4049_v55 = vadd.f32 %v2403_v34, %v5492_v22  ;;  %v2536_v50 = vadd.f32 %v4046_v36, %v2535_v40 }
 0x1e3   : > { %2523 = vst [vmem:[%s4502_s20 + $0x38] sm:$0xff] %v4048_v53  ;;  %2530 = vst [vmem:[%s4502_s20 + $0x70] sm:$0xff] %v5535_v47 }
 0x1e4   : > { %2522 = vst [vmem:[%s4502_s20 + $0x30] sm:$0xff] %v4049_v55  ;;  %v2537_v58 = vadd.f32 %v4049_v55, %v2536_v50  ;;  %v2559_v44 = vmul.f32 %v4049_v55, %v4049_v55  ;;  %v2573_v48 = vadd.f32 %v2572_v14, %v2558_v4 }
 0x1e5   : > { %4264 = shalt.err (!%p4261_p13)
}
 0x1e6   : > { %s4265_s20 = scalar_lea.hbm %s5545_s23, 2048  ;;  %s4269_s6 = scalar_lea.hbm %s5653_s2, 8192 }
 0x1e7   : > { %p4266_p0 = scmp.ne.s32.totalorder %s5545_s23, %s4265_s20  ;;  %p4270_p5 = scmp.lt.u32.totalorder %s5545_s23, %s5653_s2 }
 0x1e8   : > { %p4271_p6 = scmp.lt.u32.totalorder %s4269_s6, %s4265_s20  ;;  %p4273_p9 = scmp.lt.u32.totalorder %s4265_s20, %s5545_s23 }
 0x1e9   : > { %p4267_p1 = pnand %p4266_p0, %p4461_p3 }
 0x1ea   : > { %p4272_p7 = por %p4271_p6, %p4270_p5 }
 0x1eb   : > { %p4268_p4 = pneg %p4267_p1 }
 0x1ec   : > { %p4274_p10 = por %p4273_p9, %p4272_p7 }
 0x1ee   : > { %p4275_p11 = pnand %p4274_p10, %p4268_p4 }
 0x1f0   : > { %4278 = shalt.err (!%p4275_p11)
}
 0x1f1   : > { %s4381_s21 = smov 128   ;;  %s4382_s25 = smov 8   ;;  %v2560_v22 = vmul.f32 %v4048_v53, %v4048_v53  ;;  %v2538_v49 = vadd.f32 %v4048_v53, %v2537_v58  ;;  %v2574_v15 = vadd.f32 %v2573_v48, %v2559_v44  ;;  %v2561_v41 = vmul.f32 %v5496_v27, %v5496_v27  ;;  %v2590_v36 = vld [vmem:[#allocation7] sm:$0x3] }
 0x1f2   : > { %4170 = dma.vmem_to_hbm [thread:$0]  (%p4461_p3), %s5537_s16, 2048, %s5545_s23, %s5553_s9, %s4381_s21, %s4381_s21, %s4382_s25   ;;  %v2562_v16 = vmul.f32 %v5494_v25, %v5494_v25  ;;  %v2563_v7 = vmul.f32 %v5506_v37, %v5506_v37  ;;  %v2564_v59 = vmul.f32 %v5504_v28, %v5504_v28  ;;  %v2565_v62 = vmul.f32 %v5521_v12, %v5521_v12 }
 0x1f3   : > { %v2539_v1 = vadd.f32 %v5496_v27, %v2538_v49  ;;  %v2575_v46 = vadd.f32 %v2574_v15, %v2560_v22  ;;  %v2567_v56 = vmul.f32 %v5535_v47, %v5535_v47  ;;  %v2568_v21 = vmul.f32 %v5532_v23, %v5532_v23  ;;  %s4383_s26 = smov [#allocation7]  }
 0x1f4   : > { %vm2591_vm2 = vcmask 1040384   ;;  %s2626_s16 = sshll.u32 %s4383_s26, 4  ;;  %s2627_s16 = int_to_ptr.vmem [resolvable:$true] %s2626_s16 }
 0x1f5   : > { %v2540_v42 = vadd.f32 %v5494_v25, %v2539_v1  ;;  %v2576_v10 = vadd.f32 %v2575_v46, %v2561_v41  ;;  %v2566_v25 = vmul.f32 %v5516_v52, %v5516_v52  ;;  %s4279_s23 = scalar_lea.vmem %s2627_s16, 32  ;;  %p4286_p0 = scmp.lt.s32.totalorder %s2627_s16, %s2627_s16 }
 0x1f6   : > { %p4280_p3 = scmp.ne.s32.totalorder %s2627_s16, %s4279_s23  ;;  %p4287_p1 = scmp.lt.s32.totalorder %s4279_s23, %s4279_s23 }
 0x1f7   : > { %v2577_v0 = vadd.f32 %v2576_v10, %v2562_v16  ;;  %v2541_v29 = vadd.f32 %v5506_v37, %v2540_v42 }
 0x1f8   : > { %p4281_p12 = pnand %p4280_p3, %p4450_p2  ;;  %p4288_p4 = por %p4287_p1, %p4286_p0 }
 0x1f9   : > { %v2542_v2 = vadd.f32 %v5504_v28, %v2541_v29  ;;  %v2578_v18 = vadd.f32 %v2577_v0, %v2563_v7 }
 0x1fa   : > { %p4282_p13 = pneg %p4281_p12 }
 0x1fb   : > { %v2543_v24 = vadd.f32 %v5521_v12, %v2542_v2  ;;  %v2579_v60 = vadd.f32 %v2578_v18, %v2564_v59 }
 0x1fc   : > { %p4289_p5 = pnand %p4288_p4, %p4282_p13 }
 0x1fd   : > { %v2544_v26 = vadd.f32 %v5516_v52, %v2543_v24  ;;  %v2580_v27 = vadd.f32 %v2579_v60, %v2565_v62 }
 0x1ff   : > { %v2545_v11 = vadd.f32 %v5535_v47, %v2544_v26  ;;  %v2581_v57 = vadd.f32 %v2580_v27, %v2566_v25 }
 0x201   : > { %v2546_v5 = vadd.f32 %v5532_v23, %v2545_v11  ;;  %v2582_v6 = vadd.f32 %v2581_v57, %v2567_v56 }
 0x203   : > { %v2547_v28 = vrot.slane %v2546_v5, 4  ;;  %v2583_v19 = vadd.f32 %v2582_v6, %v2568_v21 }
 0x205   : > { %v2548_v20 = vadd.f32 %v2547_v28, %v2546_v5  ;;  %v2584_v39 = vrot.slane %v2583_v19, 4 }
 0x207   : > { %v2549_v37 = vrot.slane %v2548_v20, 2  ;;  %v2585_v38 = vadd.f32 %v2584_v39, %v2583_v19 }
 0x209   : > { %v2550_v43 = vadd.f32 %v2549_v37, %v2548_v20  ;;  %v2586_v54 = vrot.slane %v2585_v38, 2 }
 0x20b   : > { %v2551_v61 = vrot.slane %v2550_v43, 1  ;;  %v2587_v51 = vadd.f32 %v2586_v54, %v2585_v38 }
 0x20d   : > { %v2588_v13 = vrot.slane %v2587_v51, 1  ;;  %v2552_v52 = vadd.f32 %v2551_v61, %v2550_v43 }
 0x20f   : > { %v2589_v17 = vadd.f32 %v2588_v13, %v2587_v51 }
 0x211   : > { %v2592_v9 = vsel %vm2591_vm2, %v2552_v52, %v2589_v17 }
 0x212   : > { %v2593_v12 = vadd.f32 %v2592_v9, %v2590_v36 }
 0x214   : > { %2594 = vst [vmem:[#allocation7] sm:$0x3] %v2593_v12 }
 0x215   : > { %4292 = shalt.err (!%p4289_p5)
}
 0x216   : > { %s4293_s8 = scalar_lea.hbm %s5654_s3, 32 }
 0x217   : > { %p4294_p6 = scmp.ne.s32.totalorder %s5654_s3, %s4293_s8  ;;  %p4299_p10 = scmp.lt.u32.totalorder %s4293_s8, %s5654_s3 }
 0x219   : > { %p4295_p7 = pnand %p4294_p6, %p4450_p2 }
 0x21b   : > { %p4296_p9 = pneg %p4295_p7 }
 0x21d   : > { %p4301_p11 = pnand %p4299_p10, %p4296_p9 }
 0x21f   : > { %4304 = shalt.err (!%p4301_p11)
}
 0x220   : > { %4172 = dma.vmem_to_hbm [thread:$0]  (%p4450_p2), %s2627_s16, 32, %s5654_s3, [#allocation8]  }
 0x221   : > { %4340 = dma.done.wait (%p4450_p2), [#allocation8], 32  }
 0x222   : > { %4342 = vsyncadd (%p4450_p2), [#allocation8], 4294967264 }
 0x223 PF: > { %p4182_p3 = scmp.ge.s32.totalorder %s4377_s19, 2  ;;  %s2642_s6 = sand.u32 1, %s4349_s12  }
 0x224   : > { %s2643_s15 = scalar_lea.sflag [#allocation6], %s2642_s6 }
 0x225   : > { %p4177_p12 = pnand %p4182_p3, %p4470_p8 }
 0x227   : > { %4344 = dma.done.wait (!%p4177_p12), %s2643_s15, 2048  }
 0x228   : > { %4346 = vsyncadd (!%p4177_p12), %s2643_s15, 4294965248  ;;  %s18_s19 = sadd.s32 1, %s4377_s19   ;;  %s5664_s24 = sld [smem:[#allocation14_spill]] }
 0x229   : > { %p15_p13 = scmp.ge.s32.totalorder %s18_s19, 6   ;;  %s5665_s12 = smov %s4353_s13 }
 0x22a   : > { %s5666_s13 = smov %s4357_s14  ;;  %s5667_s14 = smov %s4479_s4 }
 0x22b   : > { %s5668_s15 = smov %s4369_s17  ;;  %s5669_s16 = smov %s4373_s18 }
 0x22c   : > { %s5670_s17 = smov %s5673_s22  ;;  %17 = sbr.rel (!%p15_p13) target bundleno = 6 (0x6), region = 195 }
 0x22e   : > { %s5671_s18 = smov %s5664_s24 }
 0x233   :  { %2648 = vsyncpa [#allocation6], 1 }
 0x234   :  { %2650 = vsyncpa [#allocation6 + $0x1], 1 }
 0x235   :  { %2651 = vsyncpa [#allocation8], 1 }
 0x236   :  { %2652 = vsyncmov [#allocation4] }
 0x239   :  { %s2653_s27 = vpop.sfrf %2652 }
 0x23a   :  { %p2943_p2 = scmp.ne.s32.totalorder %s2653_s27, 0 }
 0x23c   :  { %2657 = shalt.err (%p2943_p2)  }
 0x23d   :  { %2659 = vsyncmov [#allocation4 + $0x1] }
 0x240   :  { %s2660_s4 = vpop.sfrf %2659 }
 0x241   :  { %p2944_p8 = scmp.ne.s32.totalorder %s2660_s4, 0 }
 0x243   :  { %2664 = shalt.err (%p2944_p8)  }

</bundles_post_ra>
